<compile_context>
chip_gen: v6e
topology: v6e:2x2x1
jax: 0.10.0
libtpu: 0.0.40
codegen_flags: <defaults>
</compile_context>

<pallas_src>
import functools

import numpy as np
import jax
import jax.numpy as jnp
from jax import lax
from jax.experimental import pallas as pl
from jax.experimental.pallas import tpu as pltpu


# ----------------------------- helpers -----------------------------

def _round_up(x, m):
    return ((x + m - 1) // m) * m


def _row_tile(n, max_tile):
    return min(max_tile, _round_up(n, 8))


def _pad_rows(x, n_pad):
    return x if x.shape[0] == n_pad else jnp.pad(x, ((0, n_pad - x.shape[0]), (0, 0)))


def _pad_cols(x, n_pad):
    return x if x.shape[1] == n_pad else jnp.pad(x, ((0, 0), (0, n_pad - x.shape[1])))


def _cparams(semantics):
    return pltpu.CompilerParams(dimension_semantics=semantics,
                                vmem_limit_bytes=32 * 1024 * 1024)


# ----------------------------- Pallas kernels -----------------------------

def _matmul_tn_kernel(a_ref, b_ref, o_ref, acc_ref):
    # o = A^T @ B, contraction over the (tiled) row axis; f32 accumulator in VMEM.
    @pl.when(pl.program_id(0) == 0)
    def _init():
        acc_ref[...] = jnp.zeros_like(acc_ref)

    a = a_ref[...].astype(jnp.bfloat16)
    b = b_ref[...].astype(jnp.bfloat16)
    acc_ref[...] += lax.dot_general(a, b, (((0,), (0,)), ((), ())),
                                    preferred_element_type=jnp.float32)

    @pl.when(pl.program_id(0) == pl.num_programs(0) - 1)
    def _fin():
        o_ref[...] = acc_ref[...]


def pallas_matmul_tn(a, b, *, max_tile=512):
    """a.T @ b with contraction over axis 0 (rows); a:[N,Ka], b:[N,Kb] -> f32 [Ka,Kb]."""
    a = a.astype(jnp.float32)
    b = b.astype(jnp.float32)
    n, ka = a.shape
    n2, kb = b.shape
    assert n == n2
    tn = _row_tile(n, max_tile)
    n_pad = _round_up(n, tn)
    a = _pad_rows(a, n_pad)     # zero-padded rows contribute nothing to the contraction
    b = _pad_rows(b, n_pad)
    return pl.pallas_call(
        _matmul_tn_kernel,
        out_shape=jax.ShapeDtypeStruct((ka, kb), jnp.float32),
        grid=(n_pad // tn,),
        in_specs=[pl.BlockSpec((tn, ka), lambda i: (i, 0)),
                  pl.BlockSpec((tn, kb), lambda i: (i, 0))],
        out_specs=pl.BlockSpec((ka, kb), lambda i: (0, 0)),
        scratch_shapes=[pltpu.VMEM((ka, kb), jnp.float32)],
        compiler_params=_cparams(("arbitrary",)),
    )(a, b)


def _euclid_kernel(x_ref, ct_ref, c2_ref, o_ref):
    # score[n,k] = |x_n|^2 - 2 x_n . c_k + |c_k|^2   (|c_k|^2 hoisted to the wrapper)
    x = x_ref[...]                                                  # [tn, D] f32
    dot = lax.dot_general(x.astype(jnp.bfloat16), ct_ref[...],      # ct: [K, D] bf16
                          (((1,), (1,)), ((), ())),
                          preferred_element_type=jnp.float32)       # [tn, K]
    x2 = jnp.sum(x * x, axis=-1, keepdims=True)
    o_ref[...] = x2 - 2.0 * dot + c2_ref[...]


def _euclid_softmax_kernel(x_ref, ct_ref, c2_ref, o_ref):
    # fused score + row softmax.  NOTE: the original subtracts a *global* mean before the
    # softmax; that constant shift is a softmax no-op and is dropped (unblocks tiling).
    x = x_ref[...]
    dot = lax.dot_general(x.astype(jnp.bfloat16), ct_ref[...],
                          (((1,), (1,)), ((), ())),
                          preferred_element_type=jnp.float32)
    s = jnp.sum(x * x, axis=-1, keepdims=True) - 2.0 * dot + c2_ref[...]
    s = s - jnp.max(s, axis=-1, keepdims=True)
    e = jnp.exp(s)
    o_ref[...] = e / jnp.sum(e, axis=-1, keepdims=True)


def _euclid_call(kernel, x, centers, *, max_tile=512):
    x = x.astype(jnp.float32)
    centers = centers.astype(jnp.float32)
    n, d = x.shape
    k = centers.shape[0]
    c2 = jnp.sum(centers * centers, axis=-1)[None, :]               # [1, K], computed once
    cb = centers.astype(jnp.bfloat16)                               # [K, D] MXU operand
    tn = _row_tile(n, max_tile)
    n_pad = _round_up(n, tn)
    xp = _pad_rows(x, n_pad)
    out = pl.pallas_call(
        kernel,
        out_shape=jax.ShapeDtypeStruct((n_pad, k), jnp.float32),
        grid=(n_pad // tn,),
        in_specs=[pl.BlockSpec((tn, d), lambda i: (i, 0)),
                  pl.BlockSpec((k, d), lambda i: (0, 0)),
                  pl.BlockSpec((1, k), lambda i: (0, 0))],
        out_specs=pl.BlockSpec((tn, k), lambda i: (i, 0)),
        compiler_params=_cparams(("parallel",)),
    )(xp, cb, c2)
    return out[:n]


def euclidean_score(x, centers, *, max_tile=512):
    return _euclid_call(_euclid_kernel, x, centers, max_tile=max_tile)


def euclidean_softmax(x, centers, *, max_tile=512):
    return _euclid_call(_euclid_softmax_kernel, x, centers, max_tile=max_tile)


def _lloyd_kernel(x_ref, ct_ref, c2_ref, sums_ref, counts_ref,
                  sums_acc, counts_acc, *, n_valid, tile_rows):
    # One fused Lloyd iteration: distances -> nearest center -> per-cluster feature sums
    # and counts, accumulated in VMEM over the row-tiled grid (x read from HBM once).
    i = pl.program_id(0)

    @pl.when(i == 0)
    def _init():
        sums_acc[...] = jnp.zeros_like(sums_acc)
        counts_acc[...] = jnp.zeros_like(counts_acc)

    x = x_ref[...]                                                  # [tn, D] f32
    # drop the |x|^2 term: it does not change the argmin.
    s = c2_ref[...] - 2.0 * lax.dot_general(
        x.astype(jnp.bfloat16), ct_ref[...],
        (((1,), (1,)), ((), ())), preferred_element_type=jnp.float32)   # [tn, K]

    col = lax.broadcasted_iota(jnp.int32, s.shape, 1)
    s_min = jnp.min(s, axis=-1, keepdims=True)
    best = jnp.min(jnp.where(s == s_min, col, jnp.int32(2 ** 30)),
                   axis=-1, keepdims=True)                          # argmin (first-min ties)
    onehot = (col == best).astype(jnp.float32)                      # [tn, K]

    row = i * tile_rows + lax.broadcasted_iota(jnp.int32, (tile_rows, 1), 0)
    onehot = onehot * (row < n_valid).astype(jnp.float32)           # mask padded rows

    sums_acc[...] += lax.dot_general(
        onehot.astype(jnp.bfloat16), x.astype(jnp.bfloat16),
        (((0,), (0,)), ((), ())), preferred_element_type=jnp.float32)   # [K, D]
    counts_acc[...] += jnp.sum(onehot, axis=0, keepdims=True)           # [1, K]

    @pl.when(i == pl.num_programs(0) - 1)
    def _fin():
        sums_ref[...] = sums_acc[...]
        counts_ref[...] = counts_acc[...]


def kmeans_fit_euclidean(x, num_clusters, iters=15, max_tile=512):
    # TODO(synk): kmeans_pytorch uses random init + convergence check (iter_limit=500);
    # here: deterministic first-K init, fixed Lloyd iterations (fused per-iteration kernel).
    x = x.astype(jnp.float32)
    n, d = x.shape
    k = num_clusters
    tn = _row_tile(n, max_tile)
    n_pad = _round_up(n, tn)
    xp = _pad_rows(x, n_pad)

    kernel = functools.partial(_lloyd_kernel, n_valid=n, tile_rows=tn)
    lloyd = pl.pallas_call(
        kernel,
        out_shape=(jax.ShapeDtypeStruct((k, d), jnp.float32),
                   jax.ShapeDtypeStruct((1, k), jnp.float32)),
        grid=(n_pad // tn,),
        in_specs=[pl.BlockSpec((tn, d), lambda i: (i, 0)),
                  pl.BlockSpec((k, d), lambda i: (0, 0)),
                  pl.BlockSpec((1, k), lambda i: (0, 0))],
        out_specs=(pl.BlockSpec((k, d), lambda i: (0, 0)),
                   pl.BlockSpec((1, k), lambda i: (0, 0))),
        scratch_shapes=[pltpu.VMEM((k, d), jnp.float32),
                        pltpu.VMEM((1, k), jnp.float32)],
        compiler_params=_cparams(("arbitrary",)),
    )

    def body(_, centers):
        c2 = jnp.sum(centers * centers, axis=-1)[None, :]
        sums, counts = lloyd(xp, centers.astype(jnp.bfloat16), c2)
        counts = counts[0]
        new_centers = sums / jnp.maximum(counts, 1.0)[:, None]
        return jnp.where((counts > 0)[:, None], new_centers, centers)

    return lax.fori_loop(0, iters, body, x[:k])


def _js_kernel(p_ref, q_ref, o_ref):
    # per-edge Jensen-Shannon divergence; inputs [K, tE] (K on sublanes), lane-dense
    # [1, tE] output.  Guarded logs so p=q=0 (padding) gives 0, not NaN.
    p = p_ref[...]
    q = q_ref[...]
    m = 0.5 * (p + q)
    logm = jnp.log(jnp.where(m > 0, m, 1.0))
    logp = jnp.log(jnp.where(p > 0, p, 1.0))
    logq = jnp.log(jnp.where(q > 0, q, 1.0))
    kl_p = jnp.sum(jnp.where(p > 0, p * (logp - logm), 0.0), axis=0, keepdims=True)
    kl_q = jnp.sum(jnp.where(q > 0, q * (logq - logm), 0.0), axis=0, keepdims=True)
    o_ref[...] = jnp.maximum(kl_p + kl_q, 0.0) * 0.5


def js_divergence_kt(p_src_t, p_dst_t, *, max_tile=4096):
    """p_src_t / p_dst_t: [K, E] per-edge endpoint distributions -> [E] JS divergence."""
    k, e = p_src_t.shape
    te = min(max_tile, _round_up(e, 128))
    e_pad = _round_up(e, te)
    pp = _pad_cols(p_src_t.astype(jnp.float32), e_pad)
    qq = _pad_cols(p_dst_t.astype(jnp.float32), e_pad)
    out = pl.pallas_call(
        _js_kernel,
        out_shape=jax.ShapeDtypeStruct((1, e_pad), jnp.float32),
        grid=(e_pad // te,),
        in_specs=[pl.BlockSpec((k, te), lambda i: (0, i)),
                  pl.BlockSpec((k, te), lambda i: (0, i))],
        out_specs=pl.BlockSpec((1, te), lambda i: (0, i)),
        compiler_params=_cparams(("parallel",)),
    )(pp, qq)
    return out[0, :e]


# ----------------------------- model pieces -----------------------------

def cluster_assignment_loss(cluster_out, embedding, label, train_mask,
                            num_label_classes, sigma=1.0, beta=0.5):
    N, K = cluster_out.shape
    C = num_label_classes  # static (host-computed max(label)+1)
    embedding = embedding.astype(jnp.float32)
    fmask = train_mask.astype(jnp.float32)

    predict_label = jnp.argmax(cluster_out, axis=-1)
    predict_one_hot = jax.nn.one_hot(predict_label, K, dtype=jnp.float32)

    label_mod = jnp.where(train_mask, label, C)
    train_label_onehot = jax.nn.one_hot(label_mod, C + 1, dtype=jnp.float32)   # [N, C+1]
    L = train_label_onehot[:, :C]                                              # [N, C]

    cluster_composition = pallas_matmul_tn(predict_one_hot, train_label_onehot)  # [K, C+1]
    has_known = jnp.sum(cluster_composition[:, :C], axis=-1) > 0                 # [K]

    # supervised per-class centers (labelled nodes only; L rows are 0 for non-train)
    supervised_cluster_center = (pallas_matmul_tn(L, embedding)
                                 / jnp.sum(L, axis=0)[:, None])                  # [C, D]

    # --- batched per-cluster, per-class labelled centers (fused K loop) ---
    Lk = (predict_one_hot * fmask[:, None])[:, :, None] * L[:, None, :]          # [N, K, C]
    Lk = Lk.reshape(N, K * C)
    num_all = pallas_matmul_tn(Lk, embedding)                                    # [K*C, D]
    den_all = jnp.maximum(jnp.sum(Lk, axis=0), 1.0)
    in_cluster_centers = num_all / den_all[:, None]                              # [K*C, D]

    # probability_func over *unlabelled* members of each cluster (softmax over dim 0),
    # evaluated for all K clusters with a single distance kernel.
    dist = -euclidean_score(embedding, in_cluster_centers) / sigma               # [N, K*C]
    member = (predict_label[:, None] == jnp.arange(K)[None, :]) & (~train_mask)[:, None]
    member = jnp.repeat(member, C, axis=1)                                       # [N, K*C]
    dist = jnp.where(member, dist, -jnp.inf)
    mx = jnp.max(dist, axis=0, keepdims=True)
    mx = jnp.where(jnp.isfinite(mx), mx, 0.0)
    ex = jnp.where(member, jnp.exp(dist - mx), 0.0)
    den = jnp.sum(ex, axis=0, keepdims=True)
    weighted = jnp.where(den > 0, ex / jnp.maximum(den, 1e-30), 0.0)             # [N, K*C]

    cluster_centers = pallas_matmul_tn(weighted, embedding).reshape(K, C, -1)    # [K, C, D]

    l2 = (jnp.sum(cluster_centers * cluster_centers, axis=-1)
          + jnp.sum(supervised_cluster_center * supervised_cluster_center, axis=-1)[None, :]
          - 2.0 * jnp.sum(cluster_centers * supervised_cluster_center[None], axis=-1))  # [K, C]

    kcc = cluster_composition[:, :C]
    kcc = kcc / jnp.maximum(jnp.sum(jnp.abs(kcc), axis=-1, keepdims=True), 1e-12)  # F.normalize p=1

    n_known = jnp.maximum(jnp.sum(has_known.astype(jnp.float32)), 1.0)
    loss = jnp.sum(jnp.where(has_known, jnp.sum(l2 * kcc, axis=-1), 0.0)) / n_known

    gram = jnp.einsum('kcd,ked->kce', cluster_centers, cluster_centers)           # [K, C, C]
    offdiag = 1.0 - jnp.eye(C, dtype=jnp.float32)
    per_cluster_reg = (jnp.sum(jnp.square(gram) * offdiag[None], axis=(-1, -2))
                       / max(C * (C - 1), 1))
    dist_reg = jnp.sum(jnp.where(has_known, per_cluster_reg, 0.0)) / n_known

    return loss + beta * dist_reg


def kmeans_drop_forward(u, v, dst2src, single_edge_mask, dropout_emb, nodrop_emb,
                        label, train_mask, rng_key, *, n_clusters, drop_rate,
                        num_label_classes, remove_size, assign_sigma=1.0,
                        assign_beta=0.5):
    """Training-mode forward (_drop) with distance_type='euclidean'."""
    N = dropout_emb.shape[0]
    E = u.shape[0]

    if drop_rate <= 0:
        edge_weight = jnp.ones((E,), jnp.float32)
        deg = jax.ops.segment_sum(edge_weight, v, num_segments=N)
        weight = edge_weight * lax.rsqrt(jnp.maximum(deg[u], 1.0) * jnp.maximum(deg[v], 1.0))
        zero = jnp.zeros((), jnp.float32)
        return jnp.ones((E,), bool), weight, zero, zero

    # --- KMeans prototype fit on detached no-drop embeddings + cluster scores ---
    nodrop_detach = jax.lax.stop_gradient(nodrop_emb)
    prototype = kmeans_fit_euclidean(nodrop_detach, n_clusters)
    cluster_out = euclidean_score(dropout_emb, prototype)               # [N, K]

    assign_loss = cluster_assignment_loss(cluster_out, dropout_emb, label,
                                          train_mask, num_label_classes,
                                          sigma=assign_sigma, beta=assign_beta)

    # --- JS-divergence guided edge scores (_compute_assignment_score) ---
    assignment_prob = euclidean_softmax(nodrop_detach, prototype)       # [N, K] fused
    probT = assignment_prob.T                                           # [K, N] (tiny)
    p_src_t = jnp.take(probT, u, axis=1)                                # [K, E]
    p_dst_t = jnp.take(probT, v, axis=1)
    guided_scores = js_divergence_kt(p_src_t, p_dst_t)                  # [E]

    smask_f = single_edge_mask.astype(jnp.float32)
    sample_prob = guided_scores * smask_f
    sample_prob = sample_prob / jnp.maximum(jnp.sum(sample_prob), 1e-30)

    # --- torch.multinomial(..., replacement=False) == Gumbel top-k sampling ---
    logp = jnp.where(sample_prob > 0, jnp.log(jnp.maximum(sample_prob, 1e-38)), -jnp.inf)
    gumbel = -jnp.log(-jnp.log(jax.random.uniform(rng_key, (E,), minval=1e-10, maxval=1.0)))
    keys = jnp.where(single_edge_mask, logp + gumbel, -jnp.inf)
    _, remove_ids = jax.lax.top_k(keys, remove_size)

    edge_weight = jnp.ones((E,), jnp.float32).at[remove_ids].set(0.0)
    edge_weight = edge_weight * edge_weight[dst2src]                    # drop both directions

    # --- EdgeWeightNorm(norm='both') on the surviving (symmetric) graph; plain JAX so
    #     XLA fuses this trivial rsqrt-multiply with segment_sum / gathers. ---
    deg = jax.ops.segment_sum(edge_weight, v, num_segments=N)
    weight = edge_weight * lax.rsqrt(jnp.maximum(deg[u], 1.0) * jnp.maximum(deg[v], 1.0))

    # TODO(synk): DGL graph.remove_edges shrinks the edge arrays dynamically; here we
    # return a static-shape keep-mask plus zeroed weights for the removed edges.
    keep_mask = edge_weight > 0
    self_label_loss = jnp.zeros((), jnp.float32)
    return keep_mask, weight, self_label_loss, assign_loss


kmeans_drop_forward_jit = jax.jit(
    kmeans_drop_forward,
    static_argnames=("n_clusters", "drop_rate", "num_label_classes",
                     "remove_size", "assign_sigma", "assign_beta"))


# ----------------------------- driver -----------------------------

if __name__ == "__main__":
    # Module hyper-params
    n_clusters = 4
    drop_rate = 0.25
    prototype_dim = 32
    input_dim = 32

    # Synthetic graph: N nodes, undirected ring + chord edges, paired directed edges.
    N = 16
    und = []
    for i in range(N):
        und.append((i, (i + 1) % N))
        und.append((i, (i + 3) % N))
    und = np.array(und, dtype=np.int32)                 # [32, 2]
    M = und.shape[0]
    u_np = np.concatenate([und[:, 0], und[:, 1]])       # [64]
    v_np = np.concatenate([und[:, 1], und[:, 0]])
    E = u_np.shape[0]
    dst2src_np = np.concatenate([np.arange(M) + M, np.arange(M)]).astype(np.int32)
    src2dst_np = np.arange(E, dtype=np.int32)
    single_mask_np = (src2dst_np == np.minimum(src2dst_np, dst2src_np)) & (u_np != v_np)
    num_single = int(single_mask_np.sum())
    remove_size = int(num_single * drop_rate)

    # Labels / train mask (host-static class count as torch.max(label)+1)
    label_np = (np.arange(N) % 2).astype(np.int32)
    train_mask_np = (np.arange(N) % 3 != 0)
    num_label_classes = int(label_np.max()) + 1

    # Deterministic inputs / params
    key = jax.random.PRNGKey(0)
    k_emb, k_drop, k_w, k_b, k_g = jax.random.split(key, 5)
    nodrop_emb = jax.random.normal(k_emb, (N, prototype_dim), dtype=jnp.float32)
    drop_mask = jax.random.bernoulli(k_drop, 0.8, (N, prototype_dim)).astype(jnp.float32)
    dropout_emb = nodrop_emb * drop_mask / 0.8          # mimics upstream dropout

    # NOTE: project_head (Linear(input_dim, prototype_dim)) is defined in __init__ but
    # never applied in forward(); initialized deterministically for parameter parity.
    project_head_w = jax.random.normal(k_w, (prototype_dim, input_dim), jnp.float32) * 0.02
    project_head_b = jnp.zeros((prototype_dim,), jnp.float32)

    u = jnp.asarray(u_np)
    v = jnp.asarray(v_np)
    dst2src = jnp.asarray(dst2src_np)
    single_edge_mask = jnp.asarray(single_mask_np)
    label = jnp.asarray(label_np)
    train_mask = jnp.asarray(train_mask_np)

    keep_mask, weight, self_label_loss, assign_loss = kmeans_drop_forward_jit(
        u, v, dst2src, single_edge_mask, dropout_emb, nodrop_emb, label, train_mask, k_g,
        n_clusters=n_clusters, drop_rate=drop_rate,
        num_label_classes=num_label_classes, remove_size=remove_size,
        assign_sigma=1.0, assign_beta=0.5)

    jax.block_until_ready((keep_mask, weight, self_label_loss, assign_loss))
    assert weight.shape == (E,)
    assert jnp.isfinite(assign_loss)
    assert bool(jnp.all(jnp.isfinite(weight)))
    print("KERNEL_OK")
</pallas_src>

<mosaic_0001>
module attributes {stable_mosaic.version = 11 : i64} {
  func.func private @main(%arg0: i32) attributes {dimension_semantics = [#tpu.dimension_semantics<core_parallel>], iteration_bounds = array<i64: 2>, tpu.core_type = #tpu.core_type<sc_scalar_subcore>, window_params = []} {
    return
  }
}

module attributes {stable_mosaic.version = 11 : i64} {
  func.func private @main(%arg0: i32) attributes {dimension_semantics = [#tpu.dimension_semantics<core_parallel>], iteration_bounds = array<i64: 2>, tpu.core_type = #tpu.core_type<sc_scalar_subcore>, window_params = []} {
    return
  }
}

module attributes {stable_mosaic.version = 11 : i64} {
  func.func @_lloyd_kernel(%arg0: i32, %arg1: memref<16x32xf32, #tpu.memory_space<vmem>>, %arg2: memref<4x32xbf16, #tpu.memory_space<vmem>>, %arg3: memref<1x4xf32, #tpu.memory_space<vmem>>, %arg4: memref<4x32xf32, #tpu.memory_space<vmem>>, %arg5: memref<1x4xf32, #tpu.memory_space<vmem>>, %arg6: memref<4x32xf32, #tpu.memory_space<vmem>>, %arg7: memref<1x4xf32, #tpu.memory_space<vmem>>) attributes {dimension_semantics = [#tpu.dimension_semantics<arbitrary>], iteration_bounds = array<i64: 1>, scalar_prefetch = 0 : i64, scratch_operands = 2 : i64, tpu.core_type = #tpu.core_type<tc>, window_params = [{transform_indices = @transform_0, window_bounds = array<i64: 16, 32>}, {pipeline_mode = #tpu.pipeline_mode<synchronous>, transform_indices = @transform_1, window_bounds = array<i64: 4, 32>}, {pipeline_mode = #tpu.pipeline_mode<synchronous>, transform_indices = @transform_2, window_bounds = array<i64: 1, 4>}, {pipeline_mode = #tpu.pipeline_mode<synchronous>, transform_indices = @transform_3, window_bounds = array<i64: 4, 32>}, {pipeline_mode = #tpu.pipeline_mode<synchronous>, transform_indices = @transform_4, window_bounds = array<i64: 1, 4>}]} {
    %c0_i32 = arith.constant 0 : i32
    %0 = arith.cmpi eq, %arg0, %c0_i32 : i32
    %1 = arith.extui %0 : i1 to i32
    %c0_i32_0 = arith.constant 0 : i32
    %2 = arith.cmpi ne, %1, %c0_i32_0 : i32
    scf.if %2 {
      %cst_22 = arith.constant 0.000000e+00 : f32
      %49 = vector.broadcast %cst_22 : f32 to vector<4x32xf32>
      %c0_23 = arith.constant 0 : index
      %c0_24 = arith.constant 0 : index
      %50 = vector.load %arg6[%c0_23, %c0_24] : memref<4x32xf32, #tpu.memory_space<vmem>>, vector<4x32xf32>
      tpu.vector_store %arg6[%c0_23, %c0_24], %49 {strides = array<i32>} : memref<4x32xf32, #tpu.memory_space<vmem>>, vector<4x32xf32>,
      %cst_25 = arith.constant 0.000000e+00 : f32
      %51 = vector.broadcast %cst_25 : f32 to vector<1x4xf32>
      %c0_26 = arith.constant 0 : index
      %c0_27 = arith.constant 0 : index
      %52 = vector.load %arg7[%c0_26, %c0_27] : memref<1x4xf32, #tpu.memory_space<vmem>>, vector<1x4xf32>
      tpu.vector_store %arg7[%c0_26, %c0_27], %51 {strides = array<i32>} : memref<1x4xf32, #tpu.memory_space<vmem>>, vector<1x4xf32>,
    } else {
    }
    %c0 = arith.constant 0 : index
    %c0_1 = arith.constant 0 : index
    %3 = vector.load %arg1[%c0, %c0_1] : memref<16x32xf32, #tpu.memory_space<vmem>>, vector<16x32xf32>
    %c0_2 = arith.constant 0 : index
    %c0_3 = arith.constant 0 : index
    %4 = vector.load %arg3[%c0_2, %c0_3] : memref<1x4xf32, #tpu.memory_space<vmem>>, vector<1x4xf32>
    %5 = arith.truncf %3 : vector<16x32xf32> to vector<16x32xbf16>
    %c0_4 = arith.constant 0 : index
    %c0_5 = arith.constant 0 : index
    %6 = vector.load %arg2[%c0_4, %c0_5] : memref<4x32xbf16, #tpu.memory_space<vmem>>, vector<4x32xbf16>
    %cst = arith.constant dense<0.000000e+00> : vector<16x4xf32>
    %7 = tpu.matmul %5, %6, %cst {dimension_numbers = #tpu.dot_dimension_numbers<[1], [1], [0], [0], [0, 0, 1, 0], [], []>} : vector<16x32xbf16>, vector<4x32xbf16>, vector<16x4xf32> -> vector<16x4xf32>
    %cst_6 = arith.constant 2.000000e+00 : f32
    %8 = vector.broadcast %cst_6 : f32 to vector<16x4xf32>
    %9 = arith.mulf %8, %7 : vector<16x4xf32>
    %10 = vector.broadcast %4 : vector<1x4xf32> to vector<16x4xf32>
    %11 = arith.subf %10, %9 : vector<16x4xf32>
    %12 = tpu.iota {dimensions = array<i32: 1>} : vector<16x4xi32>
    %cst_7 = arith.constant dense<0x7F800000> : vector<16xf32>
    %13 = vector.multi_reduction <minimumf>, %11, %cst_7 [1] : vector<16x4xf32> to vector<16xf32>
    %14 = vector.shape_cast %13 : vector<16xf32> to vector<16x1xf32>
    %15 = vector.broadcast %14 : vector<16x1xf32> to vector<16x4xf32>
    %16 = arith.cmpf oeq, %11, %15 : vector<16x4xf32>
    %c1073741824_i32 = arith.constant 1073741824 : i32
    %17 = vector.broadcast %c1073741824_i32 : i32 to vector<16x4xi32>
    %18 = arith.select %16, %12, %17 : vector<16x4xi1>, vector<16x4xi32>
    %cst_8 = arith.constant dense<2147483647> : vector<16xi32>
    %19 = vector.multi_reduction <minsi>, %18, %cst_8 [1] : vector<16x4xi32> to vector<16xi32>
    %20 = vector.shape_cast %19 : vector<16xi32> to vector<16x1xi32>
    %21 = vector.broadcast %20 : vector<16x1xi32> to vector<16x4xi32>
    %22 = arith.cmpi eq, %12, %21 : vector<16x4xi32>
    %23 = arith.extui %22 : vector<16x4xi1> to vector<16x4xi32>
    %24 = arith.sitofp %23 : vector<16x4xi32> to vector<16x4xf32>
    %c16_i32 = arith.constant 16 : i32
    %25 = arith.muli %arg0, %c16_i32 : i32
    %26 = tpu.iota {dimensions = array<i32: 0>} : vector<16x1xi32>
    %27 = vector.broadcast %25 : i32 to vector<16x1xi32>
    %28 = arith.addi %27, %26 : vector<16x1xi32>
    %c16_i32_9 = arith.constant 16 : i32
    %29 = vector.broadcast %c16_i32_9 : i32 to vector<16x1xi32>
    %30 = arith.cmpi slt, %28, %29 : vector<16x1xi32>
    %31 = arith.extui %30 : vector<16x1xi1> to vector<16x1xi32>
    %32 = arith.sitofp %31 : vector<16x1xi32> to vector<16x1xf32>
    %33 = vector.broadcast %32 : vector<16x1xf32> to vector<16x4xf32>
    %34 = arith.mulf %24, %33 : vector<16x4xf32>
    %c0_10 = arith.constant 0 : index
    %c0_11 = arith.constant 0 : index
    %35 = vector.load %arg6[%c0_10, %c0_11] : memref<4x32xf32, #tpu.memory_space<vmem>>, vector<4x32xf32>
    %36 = arith.truncf %34 : vector<16x4xf32> to vector<16x4xbf16>
    %37 = arith.truncf %3 : vector<16x32xf32> to vector<16x32xbf16>
    %cst_12 = arith.constant dense<0.000000e+00> : vector<4x32xf32>
    %38 = tpu.matmul %36, %37, %cst_12 {dimension_numbers = #tpu.dot_dimension_numbers<[0], [0], [1], [1], [0, 1, 1, 1], [], []>} : vector<16x4xbf16>, vector<16x32xbf16>, vector<4x32xf32> -> vector<4x32xf32>
    %39 = arith.addf %35, %38 : vector<4x32xf32>
    %c0_13 = arith.constant 0 : index
    %c0_14 = arith.constant 0 : index
    %40 = vector.load %arg6[%c0_13, %c0_14] : memref<4x32xf32, #tpu.memory_space<vmem>>, vector<4x32xf32>
    tpu.vector_store %arg6[%c0_13, %c0_14], %39 {strides = array<i32>} : memref<4x32xf32, #tpu.memory_space<vmem>>, vector<4x32xf32>,
    %c0_15 = arith.constant 0 : index
    %c0_16 = arith.constant 0 : index
    %41 = vector.load %arg7[%c0_15, %c0_16] : memref<1x4xf32, #tpu.memory_space<vmem>>, vector<1x4xf32>
    %cst_17 = arith.constant dense<0.000000e+00> : vector<4xf32>
    %42 = vector.multi_reduction <add>, %34, %cst_17 [0] : vector<16x4xf32> to vector<4xf32>
    %43 = vector.shape_cast %42 : vector<4xf32> to vector<1x4xf32>
    %44 = arith.addf %41, %43 : vector<1x4xf32>
    %c0_18 = arith.constant 0 : index
    %c0_19 = arith.constant 0 : index
    %45 = vector.load %arg7[%c0_18, %c0_19] : memref<1x4xf32, #tpu.memory_space<vmem>>, vector<1x4xf32>
    tpu.vector_store %arg7[%c0_18, %c0_19], %44 {strides = array<i32>} : memref<1x4xf32, #tpu.memory_space<vmem>>, vector<1x4xf32>,
    %c0_i32_20 = arith.constant 0 : i32
    %46 = arith.cmpi eq, %arg0, %c0_i32_20 : i32
    %47 = arith.extui %46 : i1 to i32
    %c0_i32_21 = arith.constant 0 : i32
    %48 = arith.cmpi ne, %47, %c0_i32_21 : i32
    scf.if %48 {
      %c0_22 = arith.constant 0 : index
      %c0_23 = arith.constant 0 : index
      %49 = vector.load %arg6[%c0_22, %c0_23] : memref<4x32xf32, #tpu.memory_space<vmem>>, vector<4x32xf32>
      %c0_24 = arith.constant 0 : index
      %c0_25 = arith.constant 0 : index
      %50 = vector.load %arg4[%c0_24, %c0_25] : memref<4x32xf32, #tpu.memory_space<vmem>>, vector<4x32xf32>
      tpu.vector_store %arg4[%c0_24, %c0_25], %49 {strides = array<i32>} : memref<4x32xf32, #tpu.memory_space<vmem>>, vector<4x32xf32>,
      %c0_26 = arith.constant 0 : index
      %c0_27 = arith.constant 0 : index
      %51 = vector.load %arg7[%c0_26, %c0_27] : memref<1x4xf32, #tpu.memory_space<vmem>>, vector<1x4xf32>
      %c0_28 = arith.constant 0 : index
      %c0_29 = arith.constant 0 : index
      %52 = vector.load %arg5[%c0_28, %c0_29] : memref<1x4xf32, #tpu.memory_space<vmem>>, vector<1x4xf32>
      tpu.vector_store %arg5[%c0_28, %c0_29], %51 {strides = array<i32>} : memref<1x4xf32, #tpu.memory_space<vmem>>, vector<1x4xf32>,
    } else {
    }
    return
  }
  func.func @transform_0(%arg0: i32) -> (i32, i32) {
    %c0_i32 = arith.constant 0 : i32
    %c0_i32_0 = arith.constant 0 : i32
    return %arg0, %c0_i32 : i32, i32
  }
  func.func @transform_1(%arg0: i32) -> (i32, i32) {
    %c0_i32 = arith.constant 0 : i32
    %c0_i32_0 = arith.constant 0 : i32
    %c0_i32_1 = arith.constant 0 : i32
    return %c0_i32, %c0_i32_0 : i32, i32
  }
  func.func @transform_2(%arg0: i32) -> (i32, i32) {
    %c0_i32 = arith.constant 0 : i32
    %c0_i32_0 = arith.constant 0 : i32
    %c0_i32_1 = arith.constant 0 : i32
    return %c0_i32, %c0_i32_0 : i32, i32
  }
  func.func @transform_3(%arg0: i32) -> (i32, i32) {
    %c0_i32 = arith.constant 0 : i32
    %c0_i32_0 = arith.constant 0 : i32
    %c0_i32_1 = arith.constant 0 : i32
    return %c0_i32, %c0_i32_0 : i32, i32
  }
  func.func @transform_4(%arg0: i32) -> (i32, i32) {
    %c0_i32 = arith.constant 0 : i32
    %c0_i32_0 = arith.constant 0 : i32
    %c0_i32_1 = arith.constant 0 : i32
    return %c0_i32, %c0_i32_0 : i32, i32
  }
}

module attributes {stable_mosaic.version = 11 : i64} {
  func.func @_euclid_kernel(%arg0: i32, %arg1: memref<16x32xf32, #tpu.memory_space<vmem>>, %arg2: memref<4x32xbf16, #tpu.memory_space<vmem>>, %arg3: memref<1x4xf32, #tpu.memory_space<vmem>>, %arg4: memref<16x4xf32, #tpu.memory_space<vmem>>) attributes {dimension_semantics = [#tpu.dimension_semantics<parallel>], iteration_bounds = array<i64: 1>, scalar_prefetch = 0 : i64, scratch_operands = 0 : i64, tpu.core_type = #tpu.core_type<tc>, window_params = [{transform_indices = @transform_0, window_bounds = array<i64: 16, 32>}, {pipeline_mode = #tpu.pipeline_mode<synchronous>, transform_indices = @transform_1, window_bounds = array<i64: 4, 32>}, {pipeline_mode = #tpu.pipeline_mode<synchronous>, transform_indices = @transform_2, window_bounds = array<i64: 1, 4>}, {transform_indices = @transform_3, window_bounds = array<i64: 16, 4>}]} {
    %c0 = arith.constant 0 : index
    %c0_0 = arith.constant 0 : index
    %0 = vector.load %arg1[%c0, %c0_0] : memref<16x32xf32, #tpu.memory_space<vmem>>, vector<16x32xf32>
    %1 = arith.truncf %0 : vector<16x32xf32> to vector<16x32xbf16>
    %c0_1 = arith.constant 0 : index
    %c0_2 = arith.constant 0 : index
    %2 = vector.load %arg2[%c0_1, %c0_2] : memref<4x32xbf16, #tpu.memory_space<vmem>>, vector<4x32xbf16>
    %cst = arith.constant dense<0.000000e+00> : vector<16x4xf32>
    %3 = tpu.matmul %1, %2, %cst {dimension_numbers = #tpu.dot_dimension_numbers<[1], [1], [0], [0], [0, 0, 1, 0], [], []>} : vector<16x32xbf16>, vector<4x32xbf16>, vector<16x4xf32> -> vector<16x4xf32>
    %4 = arith.mulf %0, %0 : vector<16x32xf32>
    %cst_3 = arith.constant dense<0.000000e+00> : vector<16xf32>
    %5 = vector.multi_reduction <add>, %4, %cst_3 [1] : vector<16x32xf32> to vector<16xf32>
    %6 = vector.shape_cast %5 : vector<16xf32> to vector<16x1xf32>
    %cst_4 = arith.constant 2.000000e+00 : f32
    %7 = vector.broadcast %cst_4 : f32 to vector<16x4xf32>
    %8 = arith.mulf %7, %3 : vector<16x4xf32>
    %9 = vector.broadcast %6 : vector<16x1xf32> to vector<16x4xf32>
    %10 = arith.subf %9, %8 : vector<16x4xf32>
    %c0_5 = arith.constant 0 : index
    %c0_6 = arith.constant 0 : index
    %11 = vector.load %arg3[%c0_5, %c0_6] : memref<1x4xf32, #tpu.memory_space<vmem>>, vector<1x4xf32>
    %12 = vector.broadcast %11 : vector<1x4xf32> to vector<16x4xf32>
    %13 = arith.addf %10, %12 : vector<16x4xf32>
    %c0_7 = arith.constant 0 : index
    %c0_8 = arith.constant 0 : index
    %14 = vector.load %arg4[%c0_7, %c0_8] : memref<16x4xf32, #tpu.memory_space<vmem>>, vector<16x4xf32>
    tpu.vector_store %arg4[%c0_7, %c0_8], %13 {strides = array<i32>} : memref<16x4xf32, #tpu.memory_space<vmem>>, vector<16x4xf32>,
    return
  }
  func.func @transform_0(%arg0: i32) -> (i32, i32) {
    %c0_i32 = arith.constant 0 : i32
    %c0_i32_0 = arith.constant 0 : i32
    return %arg0, %c0_i32 : i32, i32
  }
  func.func @transform_1(%arg0: i32) -> (i32, i32) {
    %c0_i32 = arith.constant 0 : i32
    %c0_i32_0 = arith.constant 0 : i32
    %c0_i32_1 = arith.constant 0 : i32
    return %c0_i32, %c0_i32_0 : i32, i32
  }
  func.func @transform_2(%arg0: i32) -> (i32, i32) {
    %c0_i32 = arith.constant 0 : i32
    %c0_i32_0 = arith.constant 0 : i32
    %c0_i32_1 = arith.constant 0 : i32
    return %c0_i32, %c0_i32_0 : i32, i32
  }
  func.func @transform_3(%arg0: i32) -> (i32, i32) {
    %c0_i32 = arith.constant 0 : i32
    %c0_i32_0 = arith.constant 0 : i32
    return %arg0, %c0_i32 : i32, i32
  }
}

module attributes {stable_mosaic.version = 11 : i64} {
  func.func @_matmul_tn_kernel(%arg0: i32, %arg1: memref<16x8xf32, #tpu.memory_space<vmem>>, %arg2: memref<16x32xf32, #tpu.memory_space<vmem>>, %arg3: memref<8x32xf32, #tpu.memory_space<vmem>>, %arg4: memref<8x32xf32, #tpu.memory_space<vmem>>) attributes {dimension_semantics = [#tpu.dimension_semantics<arbitrary>], iteration_bounds = array<i64: 1>, scalar_prefetch = 0 : i64, scratch_operands = 1 : i64, tpu.core_type = #tpu.core_type<tc>, window_params = [{transform_indices = @transform_0, window_bounds = array<i64: 16, 8>}, {transform_indices = @transform_1, window_bounds = array<i64: 16, 32>}, {pipeline_mode = #tpu.pipeline_mode<synchronous>, transform_indices = @transform_2, window_bounds = array<i64: 8, 32>}]} {
    %c0_i32 = arith.constant 0 : i32
    %0 = arith.cmpi eq, %arg0, %c0_i32 : i32
    %1 = arith.extui %0 : i1 to i32
    %c0_i32_0 = arith.constant 0 : i32
    %2 = arith.cmpi ne, %1, %c0_i32_0 : i32
    scf.if %2 {
      %cst_10 = arith.constant 0.000000e+00 : f32
      %14 = vector.broadcast %cst_10 : f32 to vector<8x32xf32>
      %c0_11 = arith.constant 0 : index
      %c0_12 = arith.constant 0 : index
      %15 = vector.load %arg4[%c0_11, %c0_12] : memref<8x32xf32, #tpu.memory_space<vmem>>, vector<8x32xf32>
      tpu.vector_store %arg4[%c0_11, %c0_12], %14 {strides = array<i32>} : memref<8x32xf32, #tpu.memory_space<vmem>>, vector<8x32xf32>,
    } else {
    }
    %c0 = arith.constant 0 : index
    %c0_1 = arith.constant 0 : index
    %3 = vector.load %arg1[%c0, %c0_1] : memref<16x8xf32, #tpu.memory_space<vmem>>, vector<16x8xf32>
    %4 = arith.truncf %3 : vector<16x8xf32> to vector<16x8xbf16>
    %c0_2 = arith.constant 0 : index
    %c0_3 = arith.constant 0 : index
    %5 = vector.load %arg2[%c0_2, %c0_3] : memref<16x32xf32, #tpu.memory_space<vmem>>, vector<16x32xf32>
    %6 = arith.truncf %5 : vector<16x32xf32> to vector<16x32xbf16>
    %c0_4 = arith.constant 0 : index
    %c0_5 = arith.constant 0 : index
    %7 = vector.load %arg4[%c0_4, %c0_5] : memref<8x32xf32, #tpu.memory_space<vmem>>, vector<8x32xf32>
    %cst = arith.constant dense<0.000000e+00> : vector<8x32xf32>
    %8 = tpu.matmul %4, %6, %cst {dimension_numbers = #tpu.dot_dimension_numbers<[0], [0], [1], [1], [0, 1, 1, 1], [], []>} : vector<16x8xbf16>, vector<16x32xbf16>, vector<8x32xf32> -> vector<8x32xf32>
    %9 = arith.addf %7, %8 : vector<8x32xf32>
    %c0_6 = arith.constant 0 : index
    %c0_7 = arith.constant 0 : index
    %10 = vector.load %arg4[%c0_6, %c0_7] : memref<8x32xf32, #tpu.memory_space<vmem>>, vector<8x32xf32>
    tpu.vector_store %arg4[%c0_6, %c0_7], %9 {strides = array<i32>} : memref<8x32xf32, #tpu.memory_space<vmem>>, vector<8x32xf32>,
    %c0_i32_8 = arith.constant 0 : i32
    %11 = arith.cmpi eq, %arg0, %c0_i32_8 : i32
    %12 = arith.extui %11 : i1 to i32
    %c0_i32_9 = arith.constant 0 : i32
    %13 = arith.cmpi ne, %12, %c0_i32_9 : i32
    scf.if %13 {
      %c0_10 = arith.constant 0 : index
      %c0_11 = arith.constant 0 : index
      %14 = vector.load %arg4[%c0_10, %c0_11] : memref<8x32xf32, #tpu.memory_space<vmem>>, vector<8x32xf32>
      %c0_12 = arith.constant 0 : index
      %c0_13 = arith.constant 0 : index
      %15 = vector.load %arg3[%c0_12, %c0_13] : memref<8x32xf32, #tpu.memory_space<vmem>>, vector<8x32xf32>
      tpu.vector_store %arg3[%c0_12, %c0_13], %14 {strides = array<i32>} : memref<8x32xf32, #tpu.memory_space<vmem>>, vector<8x32xf32>,
    } else {
    }
    return
  }
  func.func @transform_0(%arg0: i32) -> (i32, i32) {
    %c0_i32 = arith.constant 0 : i32
    %c0_i32_0 = arith.constant 0 : i32
    return %arg0, %c0_i32 : i32, i32
  }
  func.func @transform_1(%arg0: i32) -> (i32, i32) {
    %c0_i32 = arith.constant 0 : i32
    %c0_i32_0 = arith.constant 0 : i32
    return %arg0, %c0_i32 : i32, i32
  }
  func.func @transform_2(%arg0: i32) -> (i32, i32) {
    %c0_i32 = arith.constant 0 : i32
    %c0_i32_0 = arith.constant 0 : i32
    %c0_i32_1 = arith.constant 0 : i32
    return %c0_i32, %c0_i32_0 : i32, i32
  }
}

module attributes {stable_mosaic.version = 11 : i64} {
  func.func @_euclid_softmax_kernel(%arg0: i32, %arg1: memref<16x32xf32, #tpu.memory_space<vmem>>, %arg2: memref<4x32xbf16, #tpu.memory_space<vmem>>, %arg3: memref<1x4xf32, #tpu.memory_space<vmem>>, %arg4: memref<16x4xf32, #tpu.memory_space<vmem>>) attributes {dimension_semantics = [#tpu.dimension_semantics<parallel>], iteration_bounds = array<i64: 1>, scalar_prefetch = 0 : i64, scratch_operands = 0 : i64, tpu.core_type = #tpu.core_type<tc>, window_params = [{transform_indices = @transform_0, window_bounds = array<i64: 16, 32>}, {pipeline_mode = #tpu.pipeline_mode<synchronous>, transform_indices = @transform_1, window_bounds = array<i64: 4, 32>}, {pipeline_mode = #tpu.pipeline_mode<synchronous>, transform_indices = @transform_2, window_bounds = array<i64: 1, 4>}, {transform_indices = @transform_3, window_bounds = array<i64: 16, 4>}]} {
    %c0 = arith.constant 0 : index
    %c0_0 = arith.constant 0 : index
    %0 = vector.load %arg1[%c0, %c0_0] : memref<16x32xf32, #tpu.memory_space<vmem>>, vector<16x32xf32>
    %1 = arith.truncf %0 : vector<16x32xf32> to vector<16x32xbf16>
    %c0_1 = arith.constant 0 : index
    %c0_2 = arith.constant 0 : index
    %2 = vector.load %arg2[%c0_1, %c0_2] : memref<4x32xbf16, #tpu.memory_space<vmem>>, vector<4x32xbf16>
    %cst = arith.constant dense<0.000000e+00> : vector<16x4xf32>
    %3 = tpu.matmul %1, %2, %cst {dimension_numbers = #tpu.dot_dimension_numbers<[1], [1], [0], [0], [0, 0, 1, 0], [], []>} : vector<16x32xbf16>, vector<4x32xbf16>, vector<16x4xf32> -> vector<16x4xf32>
    %4 = arith.mulf %0, %0 : vector<16x32xf32>
    %cst_3 = arith.constant dense<0.000000e+00> : vector<16xf32>
    %5 = vector.multi_reduction <add>, %4, %cst_3 [1] : vector<16x32xf32> to vector<16xf32>
    %6 = vector.shape_cast %5 : vector<16xf32> to vector<16x1xf32>
    %cst_4 = arith.constant 2.000000e+00 : f32
    %7 = vector.broadcast %cst_4 : f32 to vector<16x4xf32>
    %8 = arith.mulf %7, %3 : vector<16x4xf32>
    %9 = vector.broadcast %6 : vector<16x1xf32> to vector<16x4xf32>
    %10 = arith.subf %9, %8 : vector<16x4xf32>
    %c0_5 = arith.constant 0 : index
    %c0_6 = arith.constant 0 : index
    %11 = vector.load %arg3[%c0_5, %c0_6] : memref<1x4xf32, #tpu.memory_space<vmem>>, vector<1x4xf32>
    %12 = vector.broadcast %11 : vector<1x4xf32> to vector<16x4xf32>
    %13 = arith.addf %10, %12 : vector<16x4xf32>
    %cst_7 = arith.constant dense<0xFF800000> : vector<16xf32>
    %14 = vector.multi_reduction <maximumf>, %13, %cst_7 [1] : vector<16x4xf32> to vector<16xf32>
    %15 = vector.shape_cast %14 : vector<16xf32> to vector<16x1xf32>
    %16 = vector.broadcast %15 : vector<16x1xf32> to vector<16x4xf32>
    %17 = arith.subf %13, %16 : vector<16x4xf32>
    %18 = math.exp %17 : vector<16x4xf32>
    %cst_8 = arith.constant dense<0.000000e+00> : vector<16xf32>
    %19 = vector.multi_reduction <add>, %18, %cst_8 [1] : vector<16x4xf32> to vector<16xf32>
    %20 = vector.shape_cast %19 : vector<16xf32> to vector<16x1xf32>
    %21 = vector.broadcast %20 : vector<16x1xf32> to vector<16x4xf32>
    %22 = arith.divf %18, %21 : vector<16x4xf32>
    %c0_9 = arith.constant 0 : index
    %c0_10 = arith.constant 0 : index
    %23 = vector.load %arg4[%c0_9, %c0_10] : memref<16x4xf32, #tpu.memory_space<vmem>>, vector<16x4xf32>
    tpu.vector_store %arg4[%c0_9, %c0_10], %22 {strides = array<i32>} : memref<16x4xf32, #tpu.memory_space<vmem>>, vector<16x4xf32>,
    return
  }
  func.func @transform_0(%arg0: i32) -> (i32, i32) {
    %c0_i32 = arith.constant 0 : i32
    %c0_i32_0 = arith.constant 0 : i32
    return %arg0, %c0_i32 : i32, i32
  }
  func.func @transform_1(%arg0: i32) -> (i32, i32) {
    %c0_i32 = arith.constant 0 : i32
    %c0_i32_0 = arith.constant 0 : i32
    %c0_i32_1 = arith.constant 0 : i32
    return %c0_i32, %c0_i32_0 : i32, i32
  }
  func.func @transform_2(%arg0: i32) -> (i32, i32) {
    %c0_i32 = arith.constant 0 : i32
    %c0_i32_0 = arith.constant 0 : i32
    %c0_i32_1 = arith.constant 0 : i32
    return %c0_i32, %c0_i32_0 : i32, i32
  }
  func.func @transform_3(%arg0: i32) -> (i32, i32) {
    %c0_i32 = arith.constant 0 : i32
    %c0_i32_0 = arith.constant 0 : i32
    return %arg0, %c0_i32 : i32, i32
  }
}

module attributes {stable_mosaic.version = 11 : i64} {
  func.func @_euclid_kernel(%arg0: i32, %arg1: memref<16x32xf32, #tpu.memory_space<vmem>>, %arg2: memref<8x32xbf16, #tpu.memory_space<vmem>>, %arg3: memref<1x8xf32, #tpu.memory_space<vmem>>, %arg4: memref<16x8xf32, #tpu.memory_space<vmem>>) attributes {dimension_semantics = [#tpu.dimension_semantics<parallel>], iteration_bounds = array<i64: 1>, scalar_prefetch = 0 : i64, scratch_operands = 0 : i64, tpu.core_type = #tpu.core_type<tc>, window_params = [{transform_indices = @transform_0, window_bounds = array<i64: 16, 32>}, {pipeline_mode = #tpu.pipeline_mode<synchronous>, transform_indices = @transform_1, window_bounds = array<i64: 8, 32>}, {pipeline_mode = #tpu.pipeline_mode<synchronous>, transform_indices = @transform_2, window_bounds = array<i64: 1, 8>}, {transform_indices = @transform_3, window_bounds = array<i64: 16, 8>}]} {
    %c0 = arith.constant 0 : index
    %c0_0 = arith.constant 0 : index
    %0 = vector.load %arg1[%c0, %c0_0] : memref<16x32xf32, #tpu.memory_space<vmem>>, vector<16x32xf32>
    %1 = arith.truncf %0 : vector<16x32xf32> to vector<16x32xbf16>
    %c0_1 = arith.constant 0 : index
    %c0_2 = arith.constant 0 : index
    %2 = vector.load %arg2[%c0_1, %c0_2] : memref<8x32xbf16, #tpu.memory_space<vmem>>, vector<8x32xbf16>
    %cst = arith.constant dense<0.000000e+00> : vector<16x8xf32>
    %3 = tpu.matmul %1, %2, %cst {dimension_numbers = #tpu.dot_dimension_numbers<[1], [1], [0], [0], [0, 0, 1, 0], [], []>} : vector<16x32xbf16>, vector<8x32xbf16>, vector<16x8xf32> -> vector<16x8xf32>
    %4 = arith.mulf %0, %0 : vector<16x32xf32>
    %cst_3 = arith.constant dense<0.000000e+00> : vector<16xf32>
    %5 = vector.multi_reduction <add>, %4, %cst_3 [1] : vector<16x32xf32> to vector<16xf32>
    %6 = vector.shape_cast %5 : vector<16xf32> to vector<16x1xf32>
    %cst_4 = arith.constant 2.000000e+00 : f32
    %7 = vector.broadcast %cst_4 : f32 to vector<16x8xf32>
    %8 = arith.mulf %7, %3 : vector<16x8xf32>
    %9 = vector.broadcast %6 : vector<16x1xf32> to vector<16x8xf32>
    %10 = arith.subf %9, %8 : vector<16x8xf32>
    %c0_5 = arith.constant 0 : index
    %c0_6 = arith.constant 0 : index
    %11 = vector.load %arg3[%c0_5, %c0_6] : memref<1x8xf32, #tpu.memory_space<vmem>>, vector<1x8xf32>
    %12 = vector.broadcast %11 : vector<1x8xf32> to vector<16x8xf32>
    %13 = arith.addf %10, %12 : vector<16x8xf32>
    %c0_7 = arith.constant 0 : index
    %c0_8 = arith.constant 0 : index
    %14 = vector.load %arg4[%c0_7, %c0_8] : memref<16x8xf32, #tpu.memory_space<vmem>>, vector<16x8xf32>
    tpu.vector_store %arg4[%c0_7, %c0_8], %13 {strides = array<i32>} : memref<16x8xf32, #tpu.memory_space<vmem>>, vector<16x8xf32>,
    return
  }
  func.func @transform_0(%arg0: i32) -> (i32, i32) {
    %c0_i32 = arith.constant 0 : i32
    %c0_i32_0 = arith.constant 0 : i32
    return %arg0, %c0_i32 : i32, i32
  }
  func.func @transform_1(%arg0: i32) -> (i32, i32) {
    %c0_i32 = arith.constant 0 : i32
    %c0_i32_0 = arith.constant 0 : i32
    %c0_i32_1 = arith.constant 0 : i32
    return %c0_i32, %c0_i32_0 : i32, i32
  }
  func.func @transform_2(%arg0: i32) -> (i32, i32) {
    %c0_i32 = arith.constant 0 : i32
    %c0_i32_0 = arith.constant 0 : i32
    %c0_i32_1 = arith.constant 0 : i32
    return %c0_i32, %c0_i32_0 : i32, i32
  }
  func.func @transform_3(%arg0: i32) -> (i32, i32) {
    %c0_i32 = arith.constant 0 : i32
    %c0_i32_0 = arith.constant 0 : i32
    return %arg0, %c0_i32 : i32, i32
  }
}

module attributes {stable_mosaic.version = 11 : i64} {
  func.func @_matmul_tn_kernel(%arg0: i32, %arg1: memref<16x4xf32, #tpu.memory_space<vmem>>, %arg2: memref<16x3xf32, #tpu.memory_space<vmem>>, %arg3: memref<4x3xf32, #tpu.memory_space<vmem>>, %arg4: memref<4x3xf32, #tpu.memory_space<vmem>>) attributes {dimension_semantics = [#tpu.dimension_semantics<arbitrary>], iteration_bounds = array<i64: 1>, scalar_prefetch = 0 : i64, scratch_operands = 1 : i64, tpu.core_type = #tpu.core_type<tc>, window_params = [{transform_indices = @transform_0, window_bounds = array<i64: 16, 4>}, {transform_indices = @transform_1, window_bounds = array<i64: 16, 3>}, {pipeline_mode = #tpu.pipeline_mode<synchronous>, transform_indices = @transform_2, window_bounds = array<i64: 4, 3>}]} {
    %c0_i32 = arith.constant 0 : i32
    %0 = arith.cmpi eq, %arg0, %c0_i32 : i32
    %1 = arith.extui %0 : i1 to i32
    %c0_i32_0 = arith.constant 0 : i32
    %2 = arith.cmpi ne, %1, %c0_i32_0 : i32
    scf.if %2 {
      %cst_10 = arith.constant 0.000000e+00 : f32
      %14 = vector.broadcast %cst_10 : f32 to vector<4x3xf32>
      %c0_11 = arith.constant 0 : index
      %c0_12 = arith.constant 0 : index
      %15 = vector.load %arg4[%c0_11, %c0_12] : memref<4x3xf32, #tpu.memory_space<vmem>>, vector<4x3xf32>
      tpu.vector_store %arg4[%c0_11, %c0_12], %14 {strides = array<i32>} : memref<4x3xf32, #tpu.memory_space<vmem>>, vector<4x3xf32>,
    } else {
    }
    %c0 = arith.constant 0 : index
    %c0_1 = arith.constant 0 : index
    %3 = vector.load %arg1[%c0, %c0_1] : memref<16x4xf32, #tpu.memory_space<vmem>>, vector<16x4xf32>
    %4 = arith.truncf %3 : vector<16x4xf32> to vector<16x4xbf16>
    %c0_2 = arith.constant 0 : index
    %c0_3 = arith.constant 0 : index
    %5 = vector.load %arg2[%c0_2, %c0_3] : memref<16x3xf32, #tpu.memory_space<vmem>>, vector<16x3xf32>
    %6 = arith.truncf %5 : vector<16x3xf32> to vector<16x3xbf16>
    %c0_4 = arith.constant 0 : index
    %c0_5 = arith.constant 0 : index
    %7 = vector.load %arg4[%c0_4, %c0_5] : memref<4x3xf32, #tpu.memory_space<vmem>>, vector<4x3xf32>
    %cst = arith.constant dense<0.000000e+00> : vector<4x3xf32>
    %8 = tpu.matmul %4, %6, %cst {dimension_numbers = #tpu.dot_dimension_numbers<[0], [0], [1], [1], [0, 1, 1, 1], [], []>} : vector<16x4xbf16>, vector<16x3xbf16>, vector<4x3xf32> -> vector<4x3xf32>
    %9 = arith.addf %7, %8 : vector<4x3xf32>
    %c0_6 = arith.constant 0 : index
    %c0_7 = arith.constant 0 : index
    %10 = vector.load %arg4[%c0_6, %c0_7] : memref<4x3xf32, #tpu.memory_space<vmem>>, vector<4x3xf32>
    tpu.vector_store %arg4[%c0_6, %c0_7], %9 {strides = array<i32>} : memref<4x3xf32, #tpu.memory_space<vmem>>, vector<4x3xf32>,
    %c0_i32_8 = arith.constant 0 : i32
    %11 = arith.cmpi eq, %arg0, %c0_i32_8 : i32
    %12 = arith.extui %11 : i1 to i32
    %c0_i32_9 = arith.constant 0 : i32
    %13 = arith.cmpi ne, %12, %c0_i32_9 : i32
    scf.if %13 {
      %c0_10 = arith.constant 0 : index
      %c0_11 = arith.constant 0 : index
      %14 = vector.load %arg4[%c0_10, %c0_11] : memref<4x3xf32, #tpu.memory_space<vmem>>, vector<4x3xf32>
      %c0_12 = arith.constant 0 : index
      %c0_13 = arith.constant 0 : index
      %15 = vector.load %arg3[%c0_12, %c0_13] : memref<4x3xf32, #tpu.memory_space<vmem>>, vector<4x3xf32>
      tpu.vector_store %arg3[%c0_12, %c0_13], %14 {strides = array<i32>} : memref<4x3xf32, #tpu.memory_space<vmem>>, vector<4x3xf32>,
    } else {
    }
    return
  }
  func.func @transform_0(%arg0: i32) -> (i32, i32) {
    %c0_i32 = arith.constant 0 : i32
    %c0_i32_0 = arith.constant 0 : i32
    return %arg0, %c0_i32 : i32, i32
  }
  func.func @transform_1(%arg0: i32) -> (i32, i32) {
    %c0_i32 = arith.constant 0 : i32
    %c0_i32_0 = arith.constant 0 : i32
    return %arg0, %c0_i32 : i32, i32
  }
  func.func @transform_2(%arg0: i32) -> (i32, i32) {
    %c0_i32 = arith.constant 0 : i32
    %c0_i32_0 = arith.constant 0 : i32
    %c0_i32_1 = arith.constant 0 : i32
    return %c0_i32, %c0_i32_0 : i32, i32
  }
}

module attributes {stable_mosaic.version = 11 : i64} {
  func.func @_matmul_tn_kernel(%arg0: i32, %arg1: memref<16x2xf32, #tpu.memory_space<vmem>>, %arg2: memref<16x32xf32, #tpu.memory_space<vmem>>, %arg3: memref<2x32xf32, #tpu.memory_space<vmem>>, %arg4: memref<2x32xf32, #tpu.memory_space<vmem>>) attributes {dimension_semantics = [#tpu.dimension_semantics<arbitrary>], iteration_bounds = array<i64: 1>, scalar_prefetch = 0 : i64, scratch_operands = 1 : i64, tpu.core_type = #tpu.core_type<tc>, window_params = [{transform_indices = @transform_0, window_bounds = array<i64: 16, 2>}, {transform_indices = @transform_1, window_bounds = array<i64: 16, 32>}, {pipeline_mode = #tpu.pipeline_mode<synchronous>, transform_indices = @transform_2, window_bounds = array<i64: 2, 32>}]} {
    %c0_i32 = arith.constant 0 : i32
    %0 = arith.cmpi eq, %arg0, %c0_i32 : i32
    %1 = arith.extui %0 : i1 to i32
    %c0_i32_0 = arith.constant 0 : i32
    %2 = arith.cmpi ne, %1, %c0_i32_0 : i32
    scf.if %2 {
      %cst_10 = arith.constant 0.000000e+00 : f32
      %14 = vector.broadcast %cst_10 : f32 to vector<2x32xf32>
      %c0_11 = arith.constant 0 : index
      %c0_12 = arith.constant 0 : index
      %15 = vector.load %arg4[%c0_11, %c0_12] : memref<2x32xf32, #tpu.memory_space<vmem>>, vector<2x32xf32>
      tpu.vector_store %arg4[%c0_11, %c0_12], %14 {strides = array<i32>} : memref<2x32xf32, #tpu.memory_space<vmem>>, vector<2x32xf32>,
    } else {
    }
    %c0 = arith.constant 0 : index
    %c0_1 = arith.constant 0 : index
    %3 = vector.load %arg1[%c0, %c0_1] : memref<16x2xf32, #tpu.memory_space<vmem>>, vector<16x2xf32>
    %4 = arith.truncf %3 : vector<16x2xf32> to vector<16x2xbf16>
    %c0_2 = arith.constant 0 : index
    %c0_3 = arith.constant 0 : index
    %5 = vector.load %arg2[%c0_2, %c0_3] : memref<16x32xf32, #tpu.memory_space<vmem>>, vector<16x32xf32>
    %6 = arith.truncf %5 : vector<16x32xf32> to vector<16x32xbf16>
    %c0_4 = arith.constant 0 : index
    %c0_5 = arith.constant 0 : index
    %7 = vector.load %arg4[%c0_4, %c0_5] : memref<2x32xf32, #tpu.memory_space<vmem>>, vector<2x32xf32>
    %cst = arith.constant dense<0.000000e+00> : vector<2x32xf32>
    %8 = tpu.matmul %4, %6, %cst {dimension_numbers = #tpu.dot_dimension_numbers<[0], [0], [1], [1], [0, 1, 1, 1], [], []>} : vector<16x2xbf16>, vector<16x32xbf16>, vector<2x32xf32> -> vector<2x32xf32>
    %9 = arith.addf %7, %8 : vector<2x32xf32>
    %c0_6 = arith.constant 0 : index
    %c0_7 = arith.constant 0 : index
    %10 = vector.load %arg4[%c0_6, %c0_7] : memref<2x32xf32, #tpu.memory_space<vmem>>, vector<2x32xf32>
    tpu.vector_store %arg4[%c0_6, %c0_7], %9 {strides = array<i32>} : memref<2x32xf32, #tpu.memory_space<vmem>>, vector<2x32xf32>,
    %c0_i32_8 = arith.constant 0 : i32
    %11 = arith.cmpi eq, %arg0, %c0_i32_8 : i32
    %12 = arith.extui %11 : i1 to i32
    %c0_i32_9 = arith.constant 0 : i32
    %13 = arith.cmpi ne, %12, %c0_i32_9 : i32
    scf.if %13 {
      %c0_10 = arith.constant 0 : index
      %c0_11 = arith.constant 0 : index
      %14 = vector.load %arg4[%c0_10, %c0_11] : memref<2x32xf32, #tpu.memory_space<vmem>>, vector<2x32xf32>
      %c0_12 = arith.constant 0 : index
      %c0_13 = arith.constant 0 : index
      %15 = vector.load %arg3[%c0_12, %c0_13] : memref<2x32xf32, #tpu.memory_space<vmem>>, vector<2x32xf32>
      tpu.vector_store %arg3[%c0_12, %c0_13], %14 {strides = array<i32>} : memref<2x32xf32, #tpu.memory_space<vmem>>, vector<2x32xf32>,
    } else {
    }
    return
  }
  func.func @transform_0(%arg0: i32) -> (i32, i32) {
    %c0_i32 = arith.constant 0 : i32
    %c0_i32_0 = arith.constant 0 : i32
    return %arg0, %c0_i32 : i32, i32
  }
  func.func @transform_1(%arg0: i32) -> (i32, i32) {
    %c0_i32 = arith.constant 0 : i32
    %c0_i32_0 = arith.constant 0 : i32
    return %arg0, %c0_i32 : i32, i32
  }
  func.func @transform_2(%arg0: i32) -> (i32, i32) {
    %c0_i32 = arith.constant 0 : i32
    %c0_i32_0 = arith.constant 0 : i32
    %c0_i32_1 = arith.constant 0 : i32
    return %c0_i32, %c0_i32_0 : i32, i32
  }
}

module attributes {stable_mosaic.version = 11 : i64} {
  func.func @_js_kernel(%arg0: i32, %arg1: memref<4x128xf32, #tpu.memory_space<vmem>>, %arg2: memref<4x128xf32, #tpu.memory_space<vmem>>, %arg3: memref<1x128xf32, #tpu.memory_space<vmem>>) attributes {dimension_semantics = [#tpu.dimension_semantics<parallel>], iteration_bounds = array<i64: 1>, scalar_prefetch = 0 : i64, scratch_operands = 0 : i64, tpu.core_type = #tpu.core_type<tc>, window_params = [{transform_indices = @transform_0, window_bounds = array<i64: 4, 128>}, {transform_indices = @transform_1, window_bounds = array<i64: 4, 128>}, {transform_indices = @transform_2, window_bounds = array<i64: 1, 128>}]} {
    %c0 = arith.constant 0 : index
    %c0_0 = arith.constant 0 : index
    %0 = vector.load %arg1[%c0, %c0_0] : memref<4x128xf32, #tpu.memory_space<vmem>>, vector<4x128xf32>
    %c0_1 = arith.constant 0 : index
    %c0_2 = arith.constant 0 : index
    %1 = vector.load %arg2[%c0_1, %c0_2] : memref<4x128xf32, #tpu.memory_space<vmem>>, vector<4x128xf32>
    %2 = arith.addf %0, %1 : vector<4x128xf32>
    %cst = arith.constant 5.000000e-01 : f32
    %3 = vector.broadcast %cst : f32 to vector<4x128xf32>
    %4 = arith.mulf %3, %2 : vector<4x128xf32>
    %cst_3 = arith.constant 0.000000e+00 : f32
    %5 = vector.broadcast %cst_3 : f32 to vector<4x128xf32>
    %6 = arith.cmpf ogt, %4, %5 : vector<4x128xf32>
    %cst_4 = arith.constant 1.000000e+00 : f32
    %7 = vector.broadcast %cst_4 : f32 to vector<4x128xf32>
    %8 = arith.select %6, %4, %7 : vector<4x128xi1>, vector<4x128xf32>
    %9 = math.log %8 : vector<4x128xf32>
    %cst_5 = arith.constant 0.000000e+00 : f32
    %10 = vector.broadcast %cst_5 : f32 to vector<4x128xf32>
    %11 = arith.cmpf ogt, %0, %10 : vector<4x128xf32>
    %cst_6 = arith.constant 1.000000e+00 : f32
    %12 = vector.broadcast %cst_6 : f32 to vector<4x128xf32>
    %13 = arith.select %11, %0, %12 : vector<4x128xi1>, vector<4x128xf32>
    %14 = math.log %13 : vector<4x128xf32>
    %cst_7 = arith.constant 0.000000e+00 : f32
    %15 = vector.broadcast %cst_7 : f32 to vector<4x128xf32>
    %16 = arith.cmpf ogt, %1, %15 : vector<4x128xf32>
    %cst_8 = arith.constant 1.000000e+00 : f32
    %17 = vector.broadcast %cst_8 : f32 to vector<4x128xf32>
    %18 = arith.select %16, %1, %17 : vector<4x128xi1>, vector<4x128xf32>
    %19 = math.log %18 : vector<4x128xf32>
    %cst_9 = arith.constant 0.000000e+00 : f32
    %20 = vector.broadcast %cst_9 : f32 to vector<4x128xf32>
    %21 = arith.cmpf ogt, %0, %20 : vector<4x128xf32>
    %22 = arith.subf %14, %9 : vector<4x128xf32>
    %23 = arith.mulf %0, %22 : vector<4x128xf32>
    %cst_10 = arith.constant 0.000000e+00 : f32
    %24 = vector.broadcast %cst_10 : f32 to vector<4x128xf32>
    %25 = arith.select %21, %23, %24 : vector<4x128xi1>, vector<4x128xf32>
    %cst_11 = arith.constant dense<0.000000e+00> : vector<128xf32>
    %26 = vector.multi_reduction <add>, %25, %cst_11 [0] : vector<4x128xf32> to vector<128xf32>
    %27 = vector.shape_cast %26 : vector<128xf32> to vector<1x128xf32>
    %cst_12 = arith.constant 0.000000e+00 : f32
    %28 = vector.broadcast %cst_12 : f32 to vector<4x128xf32>
    %29 = arith.cmpf ogt, %1, %28 : vector<4x128xf32>
    %30 = arith.subf %19, %9 : vector<4x128xf32>
    %31 = arith.mulf %1, %30 : vector<4x128xf32>
    %cst_13 = arith.constant 0.000000e+00 : f32
    %32 = vector.broadcast %cst_13 : f32 to vector<4x128xf32>
    %33 = arith.select %29, %31, %32 : vector<4x128xi1>, vector<4x128xf32>
    %cst_14 = arith.constant dense<0.000000e+00> : vector<128xf32>
    %34 = vector.multi_reduction <add>, %33, %cst_14 [0] : vector<4x128xf32> to vector<128xf32>
    %35 = vector.shape_cast %34 : vector<128xf32> to vector<1x128xf32>
    %36 = arith.addf %27, %35 : vector<1x128xf32>
    %cst_15 = arith.constant 0.000000e+00 : f32
    %37 = vector.broadcast %cst_15 : f32 to vector<1x128xf32>
    %38 = arith.maximumf %36, %37 : vector<1x128xf32>
    %cst_16 = arith.constant 5.000000e-01 : f32
    %39 = vector.broadcast %cst_16 : f32 to vector<1x128xf32>
    %40 = arith.mulf %38, %39 : vector<1x128xf32>
    %c0_17 = arith.constant 0 : index
    %c0_18 = arith.constant 0 : index
    %41 = vector.load %arg3[%c0_17, %c0_18] : memref<1x128xf32, #tpu.memory_space<vmem>>, vector<1x128xf32>
    tpu.vector_store %arg3[%c0_17, %c0_18], %40 {strides = array<i32>} : memref<1x128xf32, #tpu.memory_space<vmem>>, vector<1x128xf32>,
    return
  }
  func.func @transform_0(%arg0: i32) -> (i32, i32) {
    %c0_i32 = arith.constant 0 : i32
    %c0_i32_0 = arith.constant 0 : i32
    return %c0_i32, %arg0 : i32, i32
  }
  func.func @transform_1(%arg0: i32) -> (i32, i32) {
    %c0_i32 = arith.constant 0 : i32
    %c0_i32_0 = arith.constant 0 : i32
    return %c0_i32, %arg0 : i32, i32
  }
  func.func @transform_2(%arg0: i32) -> (i32, i32) {
    %c0_i32 = arith.constant 0 : i32
    %c0_i32_0 = arith.constant 0 : i32
    return %c0_i32, %arg0 : i32, i32
  }
}

</mosaic_0001>

<bundles_post_ra>
// kernel: kmeans_drop_forward.10
= control target key start
LH: loop header
LB: loop body
LE: loop exit
PB: predicated region body
PF: predicated region fallthrough
CT: control target
= control target key end

     0   :  { %vm19_vm0 = vcmask 261120   ;;  %v107_v0 = vmov 0.0   ;;  %vm108_vm1 = vmmov 0   ;;  %vm88_vm2 = vcmask 31744   ;;  %s151_s1 = inlined_call_operand.vmem [shape: bf16[4,32], index: 1, kind: input, shape index: {}]   ;;  %s152_s0 = inlined_call_operand.vmem [shape: f32[16,32], index: 0, kind: input, shape index: {}]   ;;  %s153_s2 = inlined_call_operand.vmem [shape: f32[1,4], index: 2, kind: input, shape index: {}]   ;;  %s154_s3 = inlined_call_operand.vmem [shape: f32[16,4], index: 3, kind: output, shape index: {}]  }
   0x1   :  { %99 = vmatprep.subr.bf16.mxu0 %v107_v0  ;;  %v18_v1 = vld [vmem:[%s151_s1] sm:$0x3]  ;;  %101 = vmatprep.mubr.msk.bf16.mxu0 %vm108_vm1, %v107_v0  ;;  %v16_v3 = vld [vmem:[%s152_s0 + $0x8] sm:$0xff] }
   0x2   :  { %v15_v2 = vld [vmem:[%s152_s0] sm:$0xff]  ;;  %v24_v4 = vsel %vm19_vm0, %v18_v1, 0  ;;  %v68_v6 = vmul.f32 %v16_v3, %v16_v3 }
   0x3   :  { %v67_v5 = vmul.f32 %v15_v2, %v15_v2  ;;  %100 = vmatpush3.bf16.xpose.msra.mxu0 %v24_v4  ;;  %v17_v8 = vpack.c.bf16 %v16_v3, %v15_v2  ;;  %v96_v13 = vld [vmem:[%s153_s2] ss:$0 sm:$0xff] }
   0x4   :  { %v72_v9 = vsel %vm19_vm0, %v68_v6, 0.0 }
   0x5   :  { %v69_v7 = vsel %vm19_vm0, %v67_v5, 0.0 }
   0x6   :  { %70 = vadd.xlane.f32.xlu0 %v69_v7 }
   0xa   :  { %73 = vadd.xlane.f32.xlu0 %v72_v9  ;;  %102 = vmatmul.mubr.msk.bf16.vlgmr.msra.gmra.mxu0 %vm19_vm0, %v17_v8 }
  0x8f   :  { %v71_v10 = vpop.xlane.xlu0 %70 }
  0x93   :  { %v74_v17 = vpop.xlane.xlu0 %73 }
  0xca   :  { %v60_v11 = vpop.f32.mrf.mxu0 }
  0xcb   :  { %v75_v12 = vmul.f32 2.0, %v60_v11 }
  0xcc   :  { %v103_v14 = vpop.f32.mrf.mxu0 }
  0xcd   :  { %v77_v15 = vsub.f32 %v71_v10, %v75_v12 }
  0xce   :  { %v63_v16 = vpop.f32.mrf.mxu0 }
  0xcf   :  { %v86_v18 = vadd.f32 %v96_v13, %v77_v15  ;;  %v76_v19 = vmul.f32 2.0, %v63_v16 }
  0xd0   :  { %v104_v20 = vpop.f32.mrf.mxu0 }
  0xd1   :  { %89 = vst.msk [vmem:[%s154_s3] sm:$0xff] %vm88_vm2, %v86_v18  ;;  %v78_v21 = vsub.f32 %v74_v17, %v76_v19 }
  0xd3   :  { %v87_v22 = vadd.f32 %v96_v13, %v78_v21 }
  0xd5   :  { %90 = vst.msk [vmem:[%s154_s3 + $0x8] sm:$0xff] %vm88_vm2, %v87_v22 }

// kernel: closed_call.3
= control target key start
LH: loop header
LB: loop body
LE: loop exit
PB: predicated region body
PF: predicated region fallthrough
CT: control target
= control target key end

     0   :  { %vm30_vm0 = vcmask 261120   ;;  %v269_v0 = vmov 0.0   ;;  %vm270_vm1 = vmmov 0   ;;  %vm90_vm2 = vcmask 31744   ;;  %s334_s1 = inlined_call_operand.vmem [shape: bf16[4,32], index: 1, kind: input, shape index: {}]   ;;  %s335_s0 = inlined_call_operand.vmem [shape: f32[16,32], index: 0, kind: input, shape index: {}]   ;;  %s336_s2 = inlined_call_operand.vmem [shape: f32[1,4], index: 2, kind: input, shape index: {}]   ;;  %s337_s4 = inlined_call_operand.vmem [shape: f32[1,4], index: 4, kind: output, shape index: {1}]   ;;  %s338_s3 = inlined_call_operand.vmem [shape: f32[4,32], index: 3, kind: output, shape index: {0}]  }
   0x1   :  { %254 = vmatprep.subr.bf16.mxu0 %v269_v0  ;;  %v29_v1 = vld [vmem:[%s334_s1] sm:$0x3]  ;;  %256 = vmatprep.mubr.msk.bf16.mxu0 %vm270_vm1, %v269_v0  ;;  %v26_v3 = vld [vmem:[%s335_s0 + $0x8] sm:$0xff]  ;;  %v88_v17 = vlaneseq  ;;  %vm23_vm7 = vcmask 24576   ;;  %vm21_vm8 = vcmask 257024   ;;  %vm170_vm11 = vcmask 130048  }
   0x2   :  { %v25_v2 = vld [vmem:[%s335_s0] sm:$0xff]  ;;  %v35_v4 = vsel %vm30_vm0, %v29_v1, 0  ;;  %260 = vmatprep.subr.bf16.mxu1 %v269_v0  ;;  %262 = vmatprep.mubr.msk.bf16.mxu1 %vm270_vm1, %v269_v0  ;;  %24 = vst.msk [vmem:[#allocation3] sm:$0x1] %vm23_vm7, %v269_v0 }
   0x3   :  { %v28_v5 = vpack.c.bf16 %v26_v3, %v25_v2  ;;  %255 = vmatpush3.bf16.xpose.msra.mxu0 %v35_v4  ;;  %v246_v7 = vld [vmem:[%s336_s2] ss:$0 sm:$0xff]  ;;  %v89_v18 = vand.u32 127, %v88_v17  ;;  %22 = vst.msk [vmem:[#allocation2] sm:$0xf] %vm21_vm8, %v269_v0 }
   0x5   :  { %261 = vmatpush3.bf16.msra.mxu1 %v28_v5 }
   0x9   :  { %v217_v58 = vld [vmem:[#allocation3] sm:$0x1] }
   0xa   :  { %257 = vmatmul.mubr.msk.bf16.vlgmr.msra.gmra.mxu0 %vm30_vm0, %v28_v5  ;;  %v152_v63 = vld [vmem:[#allocation2] sm:$0xf] }
  0xca   :  { %v71_v6 = vpop.f32.mrf.mxu0 }
  0xcb   :  { %v78_v8 = vmul.f32 2.0, %v71_v6 }
  0xcc   :  { %v258_v9 = vpop.f32.mrf.mxu0 }
  0xcd   :  { %v86_v10 = vsub.f32 %v246_v7, %v78_v8 }
  0xce   :  { %v74_v11 = vpop.f32.mrf.mxu0 }
  0xcf   :  { %v79_v12 = vmul.f32 2.0, %v74_v11  ;;  %v91_v13 = vsel %vm90_vm2, %v86_v10, inf }
  0xd0   :  { %92 = vmin.xlane.f32.xlu0 %v91_v13  ;;  %v259_v14 = vpop.f32.mrf.mxu0 }
  0xd1   :  { %v87_v15 = vsub.f32 %v246_v7, %v79_v12 }
  0xd3   :  { %v94_v16 = vsel %vm90_vm2, %v87_v15, inf }
  0xd4   :  { %95 = vmin.xlane.f32.xlu0 %v94_v16 }
 0x159   :  { %v93_v19 = vpop.xlane.xlu0 %92 }
 0x15a   :  { %vm97_vm3 = vcmp.eq.f32.partialorder %v86_v10, %v93_v19 }
 0x15b   :  { %v99_v20 = vsel %vm97_vm3, %v89_v18, 1073741824 }
 0x15c   :  { %v101_v21 = vsel %vm90_vm2, %v99_v20, 2147483647 }
 0x15d   :  { %v96_v22 = vpop.xlane.xlu0 %95  ;;  %v103_v23 = vshra.s32 %v101_v21, 16  ;;  %v102_v29 = vand.u32 65535, %v101_v21 }
 0x15e   :  { %vm98_vm4 = vcmp.eq.f32.partialorder %v87_v15, %v96_v22 }
 0x15f   :  { %v100_v24 = vsel %vm98_vm4, %v89_v18, 1073741824  ;;  %v105_v25 = vcvt.s32.f32 %v103_v23  ;;  %v104_v31 = vcvt.s32.f32 %v102_v29 }
 0x160   :  { %v116_v26 = vsel %vm90_vm2, %v100_v24, 2147483647 }
 0x161   :  { %106 = vmin.xlane.f32.xlu1 %v105_v25  ;;  %v118_v27 = vshra.s32 %v116_v26, 16  ;;  %v117_v32 = vand.u32 65535, %v116_v26 }
 0x163   :  { %v120_v28 = vcvt.s32.f32 %v118_v27  ;;  %v119_v35 = vcvt.s32.f32 %v117_v32 }
 0x165   :  { %121 = vmin.xlane.f32.xlu1 %v120_v28 }
 0x1ea   :  { %v107_v30 = vpop.xlane.xlu1 %106 }
 0x1eb   :  { %vm108_vm5 = vcmp.eq.f32.partialorder %v105_v25, %v107_v30  ;;  %v113_v37 = vcvt.f32.s32 %v107_v30 }
 0x1ec   :  { %v109_v33 = vsel %vm108_vm5, %v104_v31, inf }
 0x1ed   :  { %110 = vmin.xlane.f32.xlu0 %v109_v33  ;;  %v114_v39 = vshll.u32 %v113_v37, 16 }
 0x1ee   :  { %v122_v34 = vpop.xlane.xlu1 %121 }
 0x1ef   :  { %vm123_vm6 = vcmp.eq.f32.partialorder %v120_v28, %v122_v34  ;;  %v128_v40 = vcvt.f32.s32 %v122_v34 }
 0x1f0   :  { %v124_v36 = vsel %vm123_vm6, %v119_v35, inf }
 0x1f1   :  { %125 = vmin.xlane.f32.xlu1 %v124_v36  ;;  %v129_v44 = vshll.u32 %v128_v40, 16 }
 0x276   :  { %v111_v38 = vpop.xlane.xlu0 %110 }
 0x277   :  { %v112_v41 = vcvt.f32.s32 %v111_v38 }
 0x279   :  { %v115_v42 = vadd.s32 %v114_v39, %v112_v41 }
 0x27a   :  { %v126_v43 = vpop.xlane.xlu1 %125 }
 0x27b   :  { %v127_v45 = vcvt.f32.s32 %v126_v43  ;;  %vm131_vm9 = vcmp.eq.s32.totalorder %v89_v18, %v115_v42 }
 0x27c   :  { %v247_v47 = vsel %vm131_vm9, 1.0, %v269_v0 }
 0x27d   :  { %v130_v46 = vadd.s32 %v129_v44, %v127_v45  ;;  %v218_v50 = vsel %vm90_vm2, %v247_v47, 0.0 }
 0x27f   :  { %vm132_vm10 = vcmp.eq.s32.totalorder %v89_v18, %v130_v46 }
 0x280   :  { %v248_v48 = vsel %vm132_vm10, 1.0, %v269_v0 }
 0x281   :  { %v153_v49 = vpack.c.bf16 %v248_v48, %v247_v47  ;;  %v219_v51 = vsel %vm90_vm2, %v248_v48, 0.0 }
 0x282   :  { %v220_v52 = vadd.f32 %v219_v51, %v218_v50 }
 0x283   :  { %154 = vxpose.xlu0.c.b16.start.end [1/1] (short) (narrow) %v153_v49, 16 }
 0x284   :  { %v221_v53 = vrot.slane %v220_v52, 4 }
 0x286   :  { %v222_v54 = vadd.f32 %v221_v53, %v220_v52 }
 0x288   :  { %v223_v55 = vrot.slane %v222_v54, 2 }
 0x28a   :  { %v224_v56 = vadd.f32 %v223_v55, %v222_v54 }
 0x28c   :  { %v225_v57 = vrot.slane %v224_v56, 1 }
 0x28e   :  { %v226_v59 = vadd.f32 %v225_v57, %v224_v56 }
 0x290   :  { %v227_v60 = vadd.f32 %v226_v59, %v217_v58 }
 0x292   :  { %229 = vst.msk [vmem:[#allocation3] sm:$0x1] %vm23_vm7, %v227_v60 }
 0x299   :  { %v235_v61 = vld [vmem:[#allocation3] sm:$0x1] }
 0x29a   :  { %236 = vst.msk [vmem:[%s337_s4] sm:$0x1] %vm23_vm7, %v235_v61 }
 0x2e5   :  { %v162_v62 = vpop.trf.xlu0 }
 0x2e6   :  { %263 = vmatmul.mubr.msk.bf16.vlgmr.msra.gmra.mxu1 %vm170_vm11, %v162_v62 }
 0x3a6   :  { %v208_v0 = vpop.f32.mrf.mxu1 }
 0x3a7   :  { %v214_v1 = vadd.f32 %v208_v0, %v152_v63 }
 0x3a8   :  { %v264_v2 = vpop.f32.mrf.mxu1 }
 0x3a9   :  { %216 = vst.msk [vmem:[#allocation2] sm:$0xf] %vm21_vm8, %v214_v1 }
 0x3aa   :  { %v211_v3 = vpop.f32.mrf.mxu1 }
 0x3ac   :  { %v265_v4 = vpop.f32.mrf.mxu1 }
 0x3b0   :  { %v233_v5 = vld [vmem:[#allocation2] sm:$0xf] }
 0x3b1   :  { %234 = vst.msk [vmem:[%s338_s3] sm:$0xf] %vm21_vm8, %v233_v5 }

// kernel: kmeans_drop_forward.12
= control target key start
LH: loop header
LB: loop body
LE: loop exit
PB: predicated region body
PF: predicated region fallthrough
CT: control target
= control target key end

     0   :  { %vm16_vm0 = vcmask 261120   ;;  %v109_v2 = vmov 0.0   ;;  %vm110_vm1 = vmmov 0   ;;  %vm41_vm2 = vcmask 130048   ;;  %s144_s0 = inlined_call_operand.vmem [shape: f32[16,8], index: 0, kind: input, shape index: {}]   ;;  %s145_s1 = inlined_call_operand.vmem [shape: f32[16,32], index: 1, kind: input, shape index: {}]   ;;  %s146_s2 = inlined_call_operand.vmem [shape: f32[8,32], index: 2, kind: output, shape index: {}]  }
   0x1   :  { %v18_v0 = vld [vmem:[%s144_s0] sm:$0xff]  ;;  %v19_v1 = vld [vmem:[%s144_s0 + $0x8] sm:$0xff]  ;;  %17 = vst.msk [vmem:[#allocation2] sm:$0xff] %vm16_vm0, %v109_v2  ;;  %100 = vmatprep.subr.bf16.mxu0 %v109_v2  ;;  %102 = vmatprep.mubr.msk.bf16.mxu0 %vm110_vm1, %v109_v2 }
   0x2   :  { %v21_v3 = vld [vmem:[%s145_s1] sm:$0xff]  ;;  %v20_v4 = vpack.c.bf16 %v19_v1, %v18_v0  ;;  %v22_v5 = vld [vmem:[%s145_s1 + $0x8] sm:$0xff] }
   0x3   :  { %v23_v6 = vpack.c.bf16 %v22_v5, %v21_v3 }
   0x4   :  { %25 = vxpose.xlu0.c.b16.start.end [1/1] (short) (narrow) %v20_v4, 16 }
   0x5   :  { %101 = vmatpush3.bf16.msra.mxu0 %v23_v6 }
   0x8   :  { %v24_v8 = vld [vmem:[#allocation2] sm:$0xff] }
  0x66   :  { %v33_v7 = vpop.trf.xlu0 }
  0x67   :  { %103 = vmatmul.mubr.msk.bf16.vlgmr.msra.gmra.mxu0 %vm41_vm2, %v33_v7 }
 0x127   :  { %v79_v9 = vpop.f32.mrf.mxu0 }
 0x128   :  { %v85_v10 = vadd.f32 %v79_v9, %v24_v8 }
 0x129   :  { %v104_v11 = vpop.f32.mrf.mxu0 }
 0x12a   :  { %87 = vst.msk [vmem:[#allocation2] sm:$0xff] %vm16_vm0, %v85_v10 }
 0x12b   :  { %v82_v12 = vpop.f32.mrf.mxu0 }
 0x12d   :  { %v105_v13 = vpop.f32.mrf.mxu0 }
 0x131   :  { %v91_v14 = vld [vmem:[#allocation2] sm:$0xff] }
 0x132   :  { %92 = vst.msk [vmem:[%s146_s2] sm:$0xff] %vm16_vm0, %v91_v14 }

// kernel: kmeans_drop_forward.8
= control target key start
LH: loop header
LB: loop body
LE: loop exit
PB: predicated region body
PF: predicated region fallthrough
CT: control target
= control target key end

     0   :  { %vm19_vm0 = vcmask 261120   ;;  %v137_v0 = vmov 0.0   ;;  %vm138_vm1 = vmmov 0   ;;  %vm88_vm2 = vcmask 31744   ;;  %s187_s1 = inlined_call_operand.vmem [shape: bf16[4,32], index: 1, kind: input, shape index: {}]   ;;  %s188_s0 = inlined_call_operand.vmem [shape: f32[16,32], index: 0, kind: input, shape index: {}]   ;;  %s189_s2 = inlined_call_operand.vmem [shape: f32[1,4], index: 2, kind: input, shape index: {}]   ;;  %s190_s3 = inlined_call_operand.vmem [shape: f32[16,4], index: 3, kind: output, shape index: {}]  }
   0x1   :  { %121 = vmatprep.subr.bf16.mxu0 %v137_v0  ;;  %v18_v1 = vld [vmem:[%s187_s1] sm:$0x3]  ;;  %123 = vmatprep.mubr.msk.bf16.mxu0 %vm138_vm1, %v137_v0  ;;  %v16_v3 = vld [vmem:[%s188_s0 + $0x8] sm:$0xff] }
   0x2   :  { %v15_v2 = vld [vmem:[%s188_s0] sm:$0xff]  ;;  %v24_v4 = vsel %vm19_vm0, %v18_v1, 0  ;;  %v68_v6 = vmul.f32 %v16_v3, %v16_v3 }
   0x3   :  { %v67_v5 = vmul.f32 %v15_v2, %v15_v2  ;;  %122 = vmatpush3.bf16.xpose.msra.mxu0 %v24_v4  ;;  %v17_v8 = vpack.c.bf16 %v16_v3, %v15_v2  ;;  %v118_v14 = vld [vmem:[%s189_s2] ss:$0 sm:$0xff] }
   0x4   :  { %v72_v9 = vsel %vm19_vm0, %v68_v6, 0.0 }
   0x5   :  { %v69_v7 = vsel %vm19_vm0, %v67_v5, 0.0 }
   0x6   :  { %70 = vadd.xlane.f32.xlu0 %v69_v7 }
   0xa   :  { %73 = vadd.xlane.f32.xlu0 %v72_v9  ;;  %124 = vmatmul.mubr.msk.bf16.vlgmr.msra.gmra.mxu0 %vm19_vm0, %v17_v8 }
  0x8f   :  { %v71_v10 = vpop.xlane.xlu0 %70 }
  0x93   :  { %v74_v17 = vpop.xlane.xlu0 %73 }
  0xca   :  { %v60_v11 = vpop.f32.mrf.mxu0 }
  0xcb   :  { %v75_v12 = vmul.f32 2.0, %v60_v11 }
  0xcc   :  { %v125_v13 = vpop.f32.mrf.mxu0 }
  0xcd   :  { %v77_v15 = vsub.f32 %v71_v10, %v75_v12 }
  0xce   :  { %v63_v16 = vpop.f32.mrf.mxu0 }
  0xcf   :  { %v76_v18 = vmul.f32 2.0, %v63_v16  ;;  %v86_v19 = vadd.f32 %v118_v14, %v77_v15 }
  0xd0   :  { %v126_v20 = vpop.f32.mrf.mxu0 }
  0xd1   :  { %v78_v21 = vsub.f32 %v74_v17, %v76_v18  ;;  %v89_v22 = vsel %vm88_vm2, %v86_v19, -inf }
  0xd2   :  { %90 = vmax.xlane.f32.xlu1 %v89_v22 }
  0xd3   :  { %v87_v23 = vadd.f32 %v118_v14, %v78_v21 }
  0xd5   :  { %v92_v24 = vsel %vm88_vm2, %v87_v23, -inf }
  0xd6   :  { %93 = vmax.xlane.f32.xlu1 %v92_v24 }
 0x15b   :  { %v91_v25 = vpop.xlane.xlu1 %90 }
 0x15c   :  { %v95_v26 = vsub.f32 %v86_v19, %v91_v25 }
 0x15e   :  { %v97_v27 = vmul.f32 1.442695, %v95_v26 }
 0x15f   :  { %v94_v28 = vpop.xlane.xlu1 %93 }
 0x160   :  { %129 = vpow2.f32 %v97_v27  ;;  %v96_v29 = vsub.f32 %v87_v23, %v94_v28 }
 0x162   :  { %v99_v30 = vmul.f32 1.442695, %v96_v29 }
 0x164   :  { %131 = vpow2.f32 %v99_v30 }
 0x16d   :  { %v130_v31 = vpop.eup %129 }
 0x16e   :  { %v101_v32 = vsel %vm88_vm2, %v130_v31, 0.0 }
 0x16f   :  { %102 = vadd.xlane.f32.xlu0 %v101_v32 }
 0x171   :  { %v132_v33 = vpop.eup %131 }
 0x172   :  { %v104_v34 = vsel %vm88_vm2, %v132_v33, 0.0 }
 0x173   :  { %105 = vadd.xlane.f32.xlu1 %v104_v34 }
 0x1f8   :  { %v103_v35 = vpop.xlane.xlu0 %102 }
 0x1f9   :  { %133 = vrcp.f32 %v103_v35 }
 0x1fc   :  { %v106_v36 = vpop.xlane.xlu1 %105 }
 0x1fd   :  { %135 = vrcp.f32 %v106_v36 }
 0x206   :  { %v134_v37 = vpop.eup %133 }
 0x207   :  { %v108_v38 = vmul.f32 %v134_v37, %v130_v31 }
 0x209   :  { %111 = vst.msk [vmem:[%s190_s3] sm:$0xff] %vm88_vm2, %v108_v38 }
 0x20a   :  { %v136_v39 = vpop.eup %135 }
 0x20b   :  { %v110_v40 = vmul.f32 %v136_v39, %v132_v33 }
 0x20d   :  { %112 = vst.msk [vmem:[%s190_s3 + $0x8] sm:$0xff] %vm88_vm2, %v110_v40 }

// kernel: kmeans_drop_forward.13
= control target key start
LH: loop header
LB: loop body
LE: loop exit
PB: predicated region body
PF: predicated region fallthrough
CT: control target
= control target key end

     0   :  { %vm19_vm0 = vcmask 261120   ;;  %v107_v0 = vmov 0.0   ;;  %vm108_vm1 = vmmov 0   ;;  %vm88_vm2 = vcmask 64512   ;;  %s151_s1 = inlined_call_operand.vmem [shape: bf16[8,32], index: 1, kind: input, shape index: {}]   ;;  %s152_s0 = inlined_call_operand.vmem [shape: f32[16,32], index: 0, kind: input, shape index: {}]   ;;  %s153_s2 = inlined_call_operand.vmem [shape: f32[1,8], index: 2, kind: input, shape index: {}]   ;;  %s154_s3 = inlined_call_operand.vmem [shape: f32[16,8], index: 3, kind: output, shape index: {}]  }
   0x1   :  { %99 = vmatprep.subr.bf16.mxu0 %v107_v0  ;;  %v18_v1 = vld [vmem:[%s151_s1] sm:$0xf]  ;;  %101 = vmatprep.mubr.msk.bf16.mxu0 %vm108_vm1, %v107_v0  ;;  %v16_v3 = vld [vmem:[%s152_s0 + $0x8] sm:$0xff] }
   0x2   :  { %v15_v2 = vld [vmem:[%s152_s0] sm:$0xff]  ;;  %v24_v4 = vsel %vm19_vm0, %v18_v1, 0  ;;  %v68_v6 = vmul.f32 %v16_v3, %v16_v3 }
   0x3   :  { %v67_v5 = vmul.f32 %v15_v2, %v15_v2  ;;  %100 = vmatpush3.bf16.xpose.msra.mxu0 %v24_v4  ;;  %v17_v8 = vpack.c.bf16 %v16_v3, %v15_v2  ;;  %v96_v13 = vld [vmem:[%s153_s2] ss:$0 sm:$0xff] }
   0x4   :  { %v72_v9 = vsel %vm19_vm0, %v68_v6, 0.0 }
   0x5   :  { %v69_v7 = vsel %vm19_vm0, %v67_v5, 0.0 }
   0x6   :  { %70 = vadd.xlane.f32.xlu0 %v69_v7 }
   0xa   :  { %73 = vadd.xlane.f32.xlu0 %v72_v9  ;;  %102 = vmatmul.mubr.msk.bf16.vlgmr.msra.gmra.mxu0 %vm19_vm0, %v17_v8 }
  0x8f   :  { %v71_v10 = vpop.xlane.xlu0 %70 }
  0x93   :  { %v74_v17 = vpop.xlane.xlu0 %73 }
  0xca   :  { %v60_v11 = vpop.f32.mrf.mxu0 }
  0xcb   :  { %v75_v12 = vmul.f32 2.0, %v60_v11 }
  0xcc   :  { %v103_v14 = vpop.f32.mrf.mxu0 }
  0xcd   :  { %v77_v15 = vsub.f32 %v71_v10, %v75_v12 }
  0xce   :  { %v63_v16 = vpop.f32.mrf.mxu0 }
  0xcf   :  { %v86_v18 = vadd.f32 %v96_v13, %v77_v15  ;;  %v76_v19 = vmul.f32 2.0, %v63_v16 }
  0xd0   :  { %v104_v20 = vpop.f32.mrf.mxu0 }
  0xd1   :  { %89 = vst.msk [vmem:[%s154_s3] sm:$0xff] %vm88_vm2, %v86_v18  ;;  %v78_v21 = vsub.f32 %v74_v17, %v76_v19 }
  0xd3   :  { %v87_v22 = vadd.f32 %v96_v13, %v78_v21 }
  0xd5   :  { %90 = vst.msk [vmem:[%s154_s3 + $0x8] sm:$0xff] %vm88_vm2, %v87_v22 }

// kernel: kmeans_drop_forward.15
= control target key start
LH: loop header
LB: loop body
LE: loop exit
PB: predicated region body
PF: predicated region fallthrough
CT: control target
= control target key end

     0   :  { %vm16_vm0 = vcmask 254976   ;;  %v109_v2 = vmov 0.0   ;;  %vm110_vm1 = vmmov 0   ;;  %vm41_vm2 = vcmask 130048   ;;  %s144_s0 = inlined_call_operand.vmem [shape: f32[16,2], index: 0, kind: input, shape index: {}]   ;;  %s145_s1 = inlined_call_operand.vmem [shape: f32[16,32], index: 1, kind: input, shape index: {}]   ;;  %s146_s2 = inlined_call_operand.vmem [shape: f32[2,32], index: 2, kind: output, shape index: {}]  }
   0x1   :  { %v18_v0 = vld [vmem:[%s144_s0] sm:$0xff]  ;;  %v19_v1 = vld [vmem:[%s144_s0 + $0x8] sm:$0xff]  ;;  %17 = vst.msk [vmem:[#allocation2] sm:$0x3] %vm16_vm0, %v109_v2  ;;  %100 = vmatprep.subr.bf16.mxu0 %v109_v2  ;;  %102 = vmatprep.mubr.msk.bf16.mxu0 %vm110_vm1, %v109_v2 }
   0x2   :  { %v21_v3 = vld [vmem:[%s145_s1] sm:$0xff]  ;;  %v20_v4 = vpack.c.bf16 %v19_v1, %v18_v0  ;;  %v22_v5 = vld [vmem:[%s145_s1 + $0x8] sm:$0xff] }
   0x3   :  { %v23_v6 = vpack.c.bf16 %v22_v5, %v21_v3 }
   0x4   :  { %25 = vxpose.xlu0.c.b16.start.end [1/1] (short) (narrow) %v20_v4, 16 }
   0x5   :  { %101 = vmatpush3.bf16.msra.mxu0 %v23_v6 }
   0x8   :  { %v24_v8 = vld [vmem:[#allocation2] sm:$0x3] }
  0x66   :  { %v33_v7 = vpop.trf.xlu0 }
  0x67   :  { %103 = vmatmul.mubr.msk.bf16.vlgmr.msra.gmra.mxu0 %vm41_vm2, %v33_v7 }
 0x127   :  { %v79_v9 = vpop.f32.mrf.mxu0 }
 0x128   :  { %v85_v10 = vadd.f32 %v79_v9, %v24_v8 }
 0x129   :  { %v104_v11 = vpop.f32.mrf.mxu0 }
 0x12a   :  { %87 = vst.msk [vmem:[#allocation2] sm:$0x3] %vm16_vm0, %v85_v10 }
 0x12b   :  { %v82_v12 = vpop.f32.mrf.mxu0 }
 0x12d   :  { %v105_v13 = vpop.f32.mrf.mxu0 }
 0x131   :  { %v91_v14 = vld [vmem:[#allocation2] sm:$0x3] }
 0x132   :  { %92 = vst.msk [vmem:[%s146_s2] sm:$0x3] %vm16_vm0, %v91_v14 }

// kernel: kmeans_drop_forward.11
= control target key start
LH: loop header
LB: loop body
LE: loop exit
PB: predicated region body
PF: predicated region fallthrough
CT: control target
= control target key end

     0   :  { %vm16_vm0 = vcmask 19456   ;;  %v109_v2 = vmov 0.0   ;;  %vm110_vm1 = vmmov 0   ;;  %vm41_vm2 = vcmask 130048   ;;  %s144_s0 = inlined_call_operand.vmem [shape: f32[16,4], index: 0, kind: input, shape index: {}]   ;;  %s145_s1 = inlined_call_operand.vmem [shape: f32[16,3], index: 1, kind: input, shape index: {}]   ;;  %s146_s2 = inlined_call_operand.vmem [shape: f32[4,3], index: 2, kind: output, shape index: {}]  }
   0x1   :  { %v18_v0 = vld [vmem:[%s144_s0] sm:$0xff]  ;;  %v19_v1 = vld [vmem:[%s144_s0 + $0x8] sm:$0xff]  ;;  %17 = vst.msk [vmem:[#allocation2] sm:$0xf] %vm16_vm0, %v109_v2  ;;  %100 = vmatprep.subr.bf16.mxu0 %v109_v2  ;;  %102 = vmatprep.mubr.msk.bf16.mxu0 %vm110_vm1, %v109_v2 }
   0x2   :  { %v21_v3 = vld [vmem:[%s145_s1] sm:$0xff]  ;;  %v20_v4 = vpack.c.bf16 %v19_v1, %v18_v0  ;;  %v22_v5 = vld [vmem:[%s145_s1 + $0x8] sm:$0xff] }
   0x3   :  { %v23_v6 = vpack.c.bf16 %v22_v5, %v21_v3 }
   0x4   :  { %25 = vxpose.xlu0.c.b16.start.end [1/1] (short) (narrow) %v20_v4, 16 }
   0x5   :  { %101 = vmatpush3.bf16.msra.mxu0 %v23_v6 }
   0x8   :  { %v24_v8 = vld [vmem:[#allocation2] sm:$0xf] }
  0x66   :  { %v33_v7 = vpop.trf.xlu0 }
  0x67   :  { %103 = vmatmul.mubr.msk.bf16.vlgmr.msra.gmra.mxu0 %vm41_vm2, %v33_v7 }
 0x127   :  { %v79_v9 = vpop.f32.mrf.mxu0 }
 0x128   :  { %v85_v10 = vadd.f32 %v79_v9, %v24_v8 }
 0x129   :  { %v104_v11 = vpop.f32.mrf.mxu0 }
 0x12a   :  { %87 = vst.msk [vmem:[#allocation2] sm:$0xf] %vm16_vm0, %v85_v10 }
 0x12b   :  { %v82_v12 = vpop.f32.mrf.mxu0 }
 0x12d   :  { %v105_v13 = vpop.f32.mrf.mxu0 }
 0x131   :  { %v91_v14 = vld [vmem:[#allocation2] sm:$0xf] }
 0x132   :  { %92 = vst.msk [vmem:[%s146_s2] sm:$0xf] %vm16_vm0, %v91_v14 }

// kernel: kmeans_drop_forward.9
= control target key start
LH: loop header
LB: loop body
LE: loop exit
PB: predicated region body
PF: predicated region fallthrough
CT: control target
= control target key end

     0   :  { %vm30_vm3 = vcmask 1043456   ;;  %s90_s0 = inlined_call_operand.vmem [shape: f32[4,128], index: 0, kind: input, shape index: {}]   ;;  %s91_s1 = inlined_call_operand.vmem [shape: f32[4,128], index: 1, kind: input, shape index: {}]   ;;  %s92_s2 = inlined_call_operand.vmem [shape: f32[1,128], index: 2, kind: output, shape index: {}]  }
   0x1   :  { %v11_v0 = vld [vmem:[%s90_s0] sm:$0xf] }
   0x2   :  { %v12_v1 = vld [vmem:[%s91_s1] sm:$0xf]  ;;  %vm19_vm0 = vcmp.gt.f32.partialorder %v11_v0, 0.0 }
   0x3   :  { %v13_v2 = vadd.f32 %v12_v1, %v11_v0  ;;  %vm23_vm1 = vcmp.gt.f32.partialorder %v12_v1, 0.0  ;;  %v20_v3 = vsel %vm19_vm0, %v11_v0, 1.0 }
   0x4   :  { %v24_v4 = vsel %vm23_vm1, %v12_v1, 1.0  ;;  %56 = vlog2.f32 %v20_v3 }
   0x5   :  { %v14_v5 = vmul.f32 0.5, %v13_v2  ;;  %58 = vlog2.f32 %v24_v4 }
   0x7   :  { %vm15_vm2 = vcmp.gt.f32.partialorder %v14_v5, 0.0 }
   0x8   :  { %v16_v6 = vsel %vm15_vm2, %v14_v5, 1.0 }
   0x9   :  { %60 = vlog2.f32 %v16_v6 }
  0x11   :  { %v57_v7 = vpop.eup %56 }
  0x12   :  { %v59_v8 = vpop.eup %58  ;;  %v22_v9 = vmul.f32 0.6931472, %v57_v7 }
  0x13   :  { %v26_v10 = vmul.f32 0.6931472, %v59_v8 }
  0x16   :  { %v61_v11 = vpop.eup %60 }
  0x17   :  { %v18_v12 = vmul.f32 0.6931472, %v61_v11 }
  0x19   :  { %v27_v13 = vsub.f32 %v22_v9, %v18_v12  ;;  %v38_v14 = vsub.f32 %v26_v10, %v18_v12 }
  0x1b   :  { %v28_v15 = vmul.f32 %v27_v13, %v11_v0  ;;  %v39_v16 = vmul.f32 %v38_v14, %v12_v1 }
  0x1d   :  { %v29_v17 = vsel %vm19_vm0, %v28_v15, 0.0  ;;  %v40_v18 = vsel %vm23_vm1, %v39_v16, 0.0 }
  0x1e   :  { %v31_v19 = vsel %vm30_vm3, %v29_v17, 0.0  ;;  %v41_v20 = vsel %vm30_vm3, %v40_v18, 0.0 }
  0x1f   :  { %v32_v21 = vrot.slane %v31_v19, 4  ;;  %v42_v22 = vrot.slane %v41_v20, 4 }
  0x21   :  { %v33_v23 = vadd.f32 %v32_v21, %v31_v19  ;;  %v43_v24 = vadd.f32 %v42_v22, %v41_v20 }
  0x23   :  { %v34_v25 = vrot.slane %v33_v23, 2  ;;  %v44_v26 = vrot.slane %v43_v24, 2 }
  0x25   :  { %v35_v27 = vadd.f32 %v34_v25, %v33_v23  ;;  %v45_v28 = vadd.f32 %v44_v26, %v43_v24 }
  0x27   :  { %v36_v29 = vrot.slane %v35_v27, 1  ;;  %v46_v30 = vrot.slane %v45_v28, 1 }
  0x29   :  { %v37_v31 = vadd.f32 %v36_v29, %v35_v27  ;;  %v47_v32 = vadd.f32 %v46_v30, %v45_v28 }
  0x2b   :  { %v48_v33 = vadd.f32 %v47_v32, %v37_v31 }
  0x2d   :  { %v49_v34 = vmax.f32 %v48_v33, 0.0 }
  0x2f   :  { %v50_v35 = vmul.f32 0.5, %v49_v34 }
  0x31   :  { %51 = vst [vmem:[%s92_s2] sm:$0x1] %v50_v35 }

</bundles_post_ra>
